<compile_context>
chip_gen: v5e
topology: v5e:2x2
jax: 0.10.0
libtpu: 0.0.40
codegen_flags: <defaults>
</compile_context>

<pallas_src>
import functools
import math

import jax
import jax.numpy as jnp
from jax.experimental import pallas as pl
from jax.experimental.pallas import tpu as pltpu

LN_EPS = 1e-5
_MIB = 1024 * 1024
_MAX_TILE_ROWS = 4096  # diminishing returns past this; bounds compile time


# ----------------------------------------------------------------------------
# Tiling helpers
# ----------------------------------------------------------------------------
def _vmem_capacity_bytes():
    try:
        return int(pltpu.get_tpu_info().vmem_capacity_bytes)
    except Exception:
        return 64 * _MIB  # conservative fallback (v7x per-TensorCore)


def _row_tiling(rows, bytes_per_row):
    """Largest row tile s.t. the double-buffered stream fits a VMEM budget."""
    cap = _vmem_capacity_bytes()
    budget = int(cap * 0.6)  # headroom for params + compiler scratch
    tr = budget // (2 * max(bytes_per_row, 1))
    tr = max(min(tr, _MAX_TILE_ROWS), 8)
    if tr >= rows:
        tr = rows  # full-extent block is always a legal block shape
    else:
        tr = max((tr // 8) * 8, 8)  # keep sublane-aligned
    need = 2 * tr * bytes_per_row + 4 * _MIB
    vmem_limit = int(min(max(need, 16 * _MIB), int(cap * 0.9)))
    return tr, vmem_limit


# ----------------------------------------------------------------------------
# Kernels
# ----------------------------------------------------------------------------
def _addnorm_kernel(x_ref, y_ref, g_ref, b_ref, o_ref):
    # residual add (dropout = identity in eval mode); stats in f32
    z = x_ref[...].astype(jnp.float32) + y_ref[...].astype(jnp.float32)
    mean = jnp.mean(z, axis=-1, keepdims=True)
    c = z - mean
    var = jnp.mean(c * c, axis=-1, keepdims=True)
    inv = jax.lax.rsqrt(var + LN_EPS)
    o_ref[...] = (c * inv * g_ref[...] + b_ref[...]).astype(o_ref.dtype)


def _linear_kernel(x_ref, w_ref, b_ref, o_ref):
    acc = jnp.dot(x_ref[...].astype(jnp.float32), w_ref[...],
                  preferred_element_type=jnp.float32)
    o_ref[...] = (acc + b_ref[...]).astype(o_ref.dtype)


def _ffn_kernel(x_ref, w1_ref, b1_ref, w2_ref, b2_ref, o_ref):
    h = jnp.dot(x_ref[...].astype(jnp.float32), w1_ref[...],
                preferred_element_type=jnp.float32) + b1_ref[...]
    h = jnp.maximum(h, 0.0)
    o = jnp.dot(h, w2_ref[...], preferred_element_type=jnp.float32) + b2_ref[...]
    o_ref[...] = o.astype(o_ref.dtype)


def _attention_kernel(q_ref, k_ref, v_ref, m_ref, o_ref, *, scale):
    # q: (tb, Sq, Dh)  k,v: (tb, Sk, Dh)  m: (Sq, Sk) additive mask
    q = q_ref[...].astype(jnp.float32)
    k = k_ref[...].astype(jnp.float32)
    v = v_ref[...].astype(jnp.float32)
    s = jnp.einsum("bqd,bkd->bqk", q, k,
                   preferred_element_type=jnp.float32) * scale
    s = s + m_ref[...][None, :, :]
    s_max = jnp.max(s, axis=-1, keepdims=True)
    p = jnp.exp(s - s_max)
    p = p / jnp.sum(p, axis=-1, keepdims=True)
    o = jnp.einsum("bqk,bkd->bqd", p, v, preferred_element_type=jnp.float32)
    o_ref[...] = o.astype(o_ref.dtype)


# ----------------------------------------------------------------------------
# Pallas wrappers
# ----------------------------------------------------------------------------
def add_norm(x, y, gamma, beta):
    """LayerNorm(y + x) over the last dim.  x, y: (..., hidden)."""
    orig_shape = x.shape
    hidden = orig_shape[-1]
    rows = x.size // hidden
    x2 = x.reshape(rows, hidden)
    y2 = y.reshape(rows, hidden)
    g2 = gamma.reshape(1, hidden).astype(jnp.float32)
    b2 = beta.reshape(1, hidden).astype(jnp.float32)

    bpr = hidden * (x2.dtype.itemsize + y2.dtype.itemsize + x.dtype.itemsize)
    tr, vmem_limit = _row_tiling(rows, bpr)

    out = pl.pallas_call(
        _addnorm_kernel,
        out_shape=jax.ShapeDtypeStruct((rows, hidden), x.dtype),
        grid_spec=pltpu.PrefetchScalarGridSpec(
            num_scalar_prefetch=0,
            grid=(pl.cdiv(rows, tr),),
            in_specs=[
                pl.BlockSpec((tr, hidden), lambda i: (i, 0)),
                pl.BlockSpec((tr, hidden), lambda i: (i, 0)),
                pl.BlockSpec((1, hidden), lambda i: (0, 0)),
                pl.BlockSpec((1, hidden), lambda i: (0, 0)),
            ],
            out_specs=pl.BlockSpec((tr, hidden), lambda i: (i, 0)),
        ),
        compiler_params=pltpu.CompilerParams(
            dimension_semantics=("parallel",),
            vmem_limit_bytes=vmem_limit,
        ),
    )(x2, y2, g2, b2)
    return out.reshape(orig_shape)


def linear(x2, w, b):
    """x2: (rows, din) @ w: (din, dout) + b: (dout,)"""
    rows, din = x2.shape
    dout = w.shape[1]
    bpr = 4 * (din + dout)  # streamed input row + output row (f32)
    tr, vmem_limit = _row_tiling(rows, bpr)

    return pl.pallas_call(
        _linear_kernel,
        out_shape=jax.ShapeDtypeStruct((rows, dout), x2.dtype),
        grid_spec=pltpu.PrefetchScalarGridSpec(
            num_scalar_prefetch=0,
            grid=(pl.cdiv(rows, tr),),
            in_specs=[
                pl.BlockSpec((tr, din), lambda i: (i, 0)),
                pl.BlockSpec((din, dout), lambda i: (0, 0)),
                pl.BlockSpec((1, dout), lambda i: (0, 0)),
            ],
            out_specs=pl.BlockSpec((tr, dout), lambda i: (i, 0)),
        ),
        compiler_params=pltpu.CompilerParams(
            dimension_semantics=("parallel",),
            vmem_limit_bytes=vmem_limit,
        ),
    )(x2, w.astype(jnp.float32), b.reshape(1, dout).astype(jnp.float32))


def ffn(x, w1, b1, w2, b2):
    """Position-wise FFN: relu(x @ w1 + b1) @ w2 + b2, fused in one kernel."""
    orig_shape = x.shape
    d = orig_shape[-1]
    rows = x.size // d
    dff = w1.shape[1]
    x2 = x.reshape(rows, d)
    bpr = 4 * (2 * d + dff)  # input row + output row + hidden row (f32)
    tr, vmem_limit = _row_tiling(rows, bpr)

    out = pl.pallas_call(
        _ffn_kernel,
        out_shape=jax.ShapeDtypeStruct((rows, d), x.dtype),
        grid_spec=pltpu.PrefetchScalarGridSpec(
            num_scalar_prefetch=0,
            grid=(pl.cdiv(rows, tr),),
            in_specs=[
                pl.BlockSpec((tr, d), lambda i: (i, 0)),
                pl.BlockSpec((d, dff), lambda i: (0, 0)),
                pl.BlockSpec((1, dff), lambda i: (0, 0)),
                pl.BlockSpec((dff, d), lambda i: (0, 0)),
                pl.BlockSpec((1, d), lambda i: (0, 0)),
            ],
            out_specs=pl.BlockSpec((tr, d), lambda i: (i, 0)),
        ),
        compiler_params=pltpu.CompilerParams(
            dimension_semantics=("parallel",),
            vmem_limit_bytes=vmem_limit,
        ),
    )(x2,
      w1.astype(jnp.float32), b1.reshape(1, dff).astype(jnp.float32),
      w2.astype(jnp.float32), b2.reshape(1, d).astype(jnp.float32))
    return out.reshape(orig_shape)


def scaled_dot_attention(q, k, v, mask):
    """q: (BH, Sq, Dh), k/v: (BH, Sk, Dh), mask: (Sq, Sk) additive."""
    BH, Sq, Dh = q.shape
    Sk = k.shape[1]
    scale = 1.0 / math.sqrt(Dh)

    # batch as many (batch*head) slices per grid step as fit the VMEM budget
    bytes_per_bh = 4 * (2 * Sq * Dh + 2 * Sk * Dh)
    cap = _vmem_capacity_bytes()
    tb = max(1, min(BH, int(cap * 0.6) // (2 * bytes_per_bh)))

    kern = functools.partial(_attention_kernel, scale=scale)
    return pl.pallas_call(
        kern,
        out_shape=jax.ShapeDtypeStruct((BH, Sq, Dh), q.dtype),
        grid_spec=pltpu.PrefetchScalarGridSpec(
            num_scalar_prefetch=0,
            grid=(pl.cdiv(BH, tb),),
            in_specs=[
                pl.BlockSpec((tb, Sq, Dh), lambda i: (i, 0, 0)),
                pl.BlockSpec((tb, Sk, Dh), lambda i: (i, 0, 0)),
                pl.BlockSpec((tb, Sk, Dh), lambda i: (i, 0, 0)),
                pl.BlockSpec((Sq, Sk), lambda i: (0, 0)),
            ],
            out_specs=pl.BlockSpec((tb, Sq, Dh), lambda i: (i, 0, 0)),
        ),
        compiler_params=pltpu.CompilerParams(
            dimension_semantics=("parallel",),
        ),
    )(q, k, v, mask.astype(jnp.float32))


# ----------------------------------------------------------------------------
# Transformer composition (JAX glue around the Pallas kernels)
# ----------------------------------------------------------------------------
def multi_head_attention(q_in, k_in, v_in, mask, p, num_heads):
    B, Sq, D = q_in.shape
    Sk = k_in.shape[1]
    Dh = D // num_heads

    def proj(x, w, b, S):
        y = linear(x.reshape(B * S, D), w, b)
        y = y.reshape(B, S, num_heads, Dh)
        return jnp.transpose(y, (0, 2, 1, 3)).reshape(B * num_heads, S, Dh)

    q = proj(q_in, p["wq"], p["bq"], Sq)
    k = proj(k_in, p["wk"], p["bk"], Sk)
    v = proj(v_in, p["wv"], p["bv"], Sk)

    o = scaled_dot_attention(q, k, v, mask)            # (B*H, Sq, Dh)
    o = o.reshape(B, num_heads, Sq, Dh)
    o = jnp.transpose(o, (0, 2, 1, 3)).reshape(B * Sq, D)
    return linear(o, p["wo"], p["bo"]).reshape(B, Sq, D)


def encoder_block(x, p, num_heads):
    S = x.shape[1]
    no_mask = jnp.zeros((S, S), jnp.float32)
    y = multi_head_attention(x, x, x, no_mask, p["attn"], num_heads)
    x1 = add_norm(x, y, p["ln1_g"], p["ln1_b"])
    y2 = ffn(x1, p["ffn_w1"], p["ffn_b1"], p["ffn_w2"], p["ffn_b2"])
    return add_norm(x1, y2, p["ln2_g"], p["ln2_b"])


def decoder_block(x, enc_out, p, num_heads):
    Sd = x.shape[1]
    Se = enc_out.shape[1]
    causal = jnp.where(jnp.arange(Sd)[:, None] >= jnp.arange(Sd)[None, :],
                       0.0, -1e9).astype(jnp.float32)
    no_mask = jnp.zeros((Sd, Se), jnp.float32)
    y = multi_head_attention(x, x, x, causal, p["self_attn"], num_heads)
    x1 = add_norm(x, y, p["ln1_g"], p["ln1_b"])
    y2 = multi_head_attention(x1, enc_out, enc_out, no_mask,
                              p["cross_attn"], num_heads)
    x2 = add_norm(x1, y2, p["ln2_g"], p["ln2_b"])
    y3 = ffn(x2, p["ffn_w1"], p["ffn_b1"], p["ffn_w2"], p["ffn_b2"])
    return add_norm(x2, y3, p["ln3_g"], p["ln3_b"])


@functools.partial(jax.jit, static_argnames=("num_heads",))
def transformer_forward(enc_X, dec_X, params, *, num_heads):
    """Transformer.forward: encoder(enc_X) -> init_state -> decoder(dec_X, state)."""
    # TODO(synk): token embedding / positional encoding / final vocab projection
    #             are not defined by the abstract base class and are omitted;
    #             enc_X / dec_X are taken as already-embedded dense inputs.
    enc_out = enc_X
    for p in params["encoder"]:
        enc_out = encoder_block(enc_out, p, num_heads)
    dec_state = enc_out                    # decoder.init_state(enc_outputs)
    dec_out = dec_X
    for p in params["decoder"]:
        dec_out = decoder_block(dec_out, dec_state, p, num_heads)
    return dec_out


# ----------------------------------------------------------------------------
# Pure-JAX reference (same math, no Pallas) for correctness checking
# ----------------------------------------------------------------------------
def _ref_layernorm(z, g, b):
    mean = jnp.mean(z, axis=-1, keepdims=True)
    var = jnp.mean((z - mean) ** 2, axis=-1, keepdims=True)
    return (z - mean) * jax.lax.rsqrt(var + LN_EPS) * g + b


def _ref_add_norm(x, y, g, b):
    return _ref_layernorm(x + y, g, b)


def _ref_mha(q_in, k_in, v_in, mask, p, num_heads):
    B, Sq, D = q_in.shape
    Sk = k_in.shape[1]
    Dh = D // num_heads

    def proj(x, w, b, S):
        y = x.reshape(B * S, D) @ w + b
        return y.reshape(B, S, num_heads, Dh).transpose(0, 2, 1, 3)

    q = proj(q_in, p["wq"], p["bq"], Sq)
    k = proj(k_in, p["wk"], p["bk"], Sk)
    v = proj(v_in, p["wv"], p["bv"], Sk)
    s = jnp.einsum("bhqd,bhkd->bhqk", q, k) / math.sqrt(Dh) + mask
    a = jax.nn.softmax(s, axis=-1)
    o = jnp.einsum("bhqk,bhkd->bhqd", a, v).transpose(0, 2, 1, 3)
    o = o.reshape(B * Sq, D) @ p["wo"] + p["bo"]
    return o.reshape(B, Sq, D)


def _ref_ffn(x, w1, b1, w2, b2):
    return jnp.maximum(x @ w1 + b1, 0.0) @ w2 + b2


def _ref_encoder_block(x, p, num_heads):
    S = x.shape[1]
    y = _ref_mha(x, x, x, jnp.zeros((S, S), jnp.float32), p["attn"], num_heads)
    x1 = _ref_add_norm(x, y, p["ln1_g"], p["ln1_b"])
    y2 = _ref_ffn(x1, p["ffn_w1"], p["ffn_b1"], p["ffn_w2"], p["ffn_b2"])
    return _ref_add_norm(x1, y2, p["ln2_g"], p["ln2_b"])


def _ref_decoder_block(x, enc_out, p, num_heads):
    Sd = x.shape[1]
    Se = enc_out.shape[1]
    causal = jnp.where(jnp.arange(Sd)[:, None] >= jnp.arange(Sd)[None, :],
                       0.0, -1e9).astype(jnp.float32)
    y = _ref_mha(x, x, x, causal, p["self_attn"], num_heads)
    x1 = _ref_add_norm(x, y, p["ln1_g"], p["ln1_b"])
    y2 = _ref_mha(x1, enc_out, enc_out, jnp.zeros((Sd, Se), jnp.float32),
                  p["cross_attn"], num_heads)
    x2 = _ref_add_norm(x1, y2, p["ln2_g"], p["ln2_b"])
    y3 = _ref_ffn(x2, p["ffn_w1"], p["ffn_b1"], p["ffn_w2"], p["ffn_b2"])
    return _ref_add_norm(x2, y3, p["ln3_g"], p["ln3_b"])


def _ref_transformer(enc_X, dec_X, params, num_heads):
    enc_out = enc_X
    for p in params["encoder"]:
        enc_out = _ref_encoder_block(enc_out, p, num_heads)
    dec_out = dec_X
    for p in params["decoder"]:
        dec_out = _ref_decoder_block(dec_out, enc_out, p, num_heads)
    return dec_out


# ----------------------------------------------------------------------------
# Parameter init
# ----------------------------------------------------------------------------
def _init_mha(key, d):
    ks = jax.random.split(key, 8)
    s = 1.0 / math.sqrt(d)
    w = lambda k: jax.random.normal(k, (d, d), jnp.float32) * s
    b = lambda k: jax.random.normal(k, (d,), jnp.float32) * 0.01
    return {"wq": w(ks[0]), "bq": b(ks[1]), "wk": w(ks[2]), "bk": b(ks[3]),
            "wv": w(ks[4]), "bv": b(ks[5]), "wo": w(ks[6]), "bo": b(ks[7])}


def _init_ffn(key, d, dff):
    k1, k2, k3, k4 = jax.random.split(key, 4)
    return {"ffn_w1": jax.random.normal(k1, (d, dff), jnp.float32) / math.sqrt(d),
            "ffn_b1": jax.random.normal(k2, (dff,), jnp.float32) * 0.01,
            "ffn_w2": jax.random.normal(k3, (dff, d), jnp.float32) / math.sqrt(dff),
            "ffn_b2": jax.random.normal(k4, (d,), jnp.float32) * 0.01}


def _ln(d):
    return jnp.ones((d,), jnp.float32), jnp.zeros((d,), jnp.float32)


def _init_encoder_block(key, d, dff):
    k1, k2 = jax.random.split(key)
    p = {"attn": _init_mha(k1, d)}
    p.update(_init_ffn(k2, d, dff))
    p["ln1_g"], p["ln1_b"] = _ln(d)
    p["ln2_g"], p["ln2_b"] = _ln(d)
    return p


def _init_decoder_block(key, d, dff):
    k1, k2, k3 = jax.random.split(key, 3)
    p = {"self_attn": _init_mha(k1, d), "cross_attn": _init_mha(k2, d)}
    p.update(_init_ffn(k3, d, dff))
    p["ln1_g"], p["ln1_b"] = _ln(d)
    p["ln2_g"], p["ln2_b"] = _ln(d)
    p["ln3_g"], p["ln3_b"] = _ln(d)
    return p


if __name__ == "__main__":
    # Small shapes: batch=2, seq=8, hidden=32, 4 heads, ffn=64, 2+2 layers.
    batch, seq_enc, seq_dec, hidden, heads, dff, nlayers = 2, 8, 8, 32, 4, 64, 2

    key = jax.random.PRNGKey(0)
    kx, ky, kp = jax.random.split(key, 3)
    enc_X = jax.random.normal(kx, (batch, seq_enc, hidden), dtype=jnp.float32)
    dec_X = jax.random.normal(ky, (batch, seq_dec, hidden), dtype=jnp.float32)

    enc_keys = jax.random.split(jax.random.fold_in(kp, 0), nlayers)
    dec_keys = jax.random.split(jax.random.fold_in(kp, 1), nlayers)
    params = {
        "encoder": [_init_encoder_block(k, hidden, dff) for k in enc_keys],
        "decoder": [_init_decoder_block(k, hidden, dff) for k in dec_keys],
    }

    out = transformer_forward(enc_X, dec_X, params, num_heads=heads)
    jax.block_until_ready(out)

    ref = _ref_transformer(enc_X, dec_X, params, heads)
    assert out.shape == ref.shape, "shape mismatch vs reference"
    assert jnp.allclose(out, ref, atol=2e-3, rtol=2e-3), "mismatch vs reference"

    # Standalone AddNorm sanity check (lane-dense path, hidden multiple of 128)
    X2 = jax.random.normal(kx, (4, 16, 128), dtype=jnp.float32)
    Y2 = jax.random.normal(ky, (4, 16, 128), dtype=jnp.float32)
    g2, b2 = jnp.ones((128,), jnp.float32), jnp.zeros((128,), jnp.float32)
    an = add_norm(X2, Y2, g2, b2)
    jax.block_until_ready(an)
    assert jnp.allclose(an, _ref_add_norm(X2, Y2, g2, b2), atol=1e-4, rtol=1e-4)

    print("KERNEL_OK")
</pallas_src>

<mosaic_0001>
module attributes {stable_mosaic.version = 11 : i64} {
  func.func @_linear_kernel(%arg0: i32, %arg1: memref<16x32xf32, #tpu.memory_space<vmem>>, %arg2: memref<32x32xf32, #tpu.memory_space<vmem>>, %arg3: memref<1x32xf32, #tpu.memory_space<vmem>>, %arg4: memref<16x32xf32, #tpu.memory_space<vmem>>) attributes {dimension_semantics = [#tpu.dimension_semantics<parallel>], iteration_bounds = array<i64: 1>, scalar_prefetch = 0 : i64, scratch_operands = 0 : i64, tpu.core_type = #tpu.core_type<tc>, window_params = [{transform_indices = @transform_0, window_bounds = array<i64: 16, 32>}, {pipeline_mode = #tpu.pipeline_mode<synchronous>, transform_indices = @transform_1, window_bounds = array<i64: 32, 32>}, {pipeline_mode = #tpu.pipeline_mode<synchronous>, transform_indices = @transform_2, window_bounds = array<i64: 1, 32>}, {transform_indices = @transform_3, window_bounds = array<i64: 16, 32>}]} {
    %c0 = arith.constant 0 : index
    %c0_0 = arith.constant 0 : index
    %0 = vector.load %arg1[%c0, %c0_0] : memref<16x32xf32, #tpu.memory_space<vmem>>, vector<16x32xf32>
    %c0_1 = arith.constant 0 : index
    %c0_2 = arith.constant 0 : index
    %1 = vector.load %arg2[%c0_1, %c0_2] : memref<32x32xf32, #tpu.memory_space<vmem>>, vector<32x32xf32>
    %cst = arith.constant dense<0.000000e+00> : vector<16x32xf32>
    %2 = tpu.matmul %0, %1, %cst {dimension_numbers = #tpu.dot_dimension_numbers<[1], [0], [0], [1], [0, 0, 1, 1], [], []>} : vector<16x32xf32>, vector<32x32xf32>, vector<16x32xf32> -> vector<16x32xf32>
    %c0_3 = arith.constant 0 : index
    %c0_4 = arith.constant 0 : index
    %3 = vector.load %arg3[%c0_3, %c0_4] : memref<1x32xf32, #tpu.memory_space<vmem>>, vector<1x32xf32>
    %4 = vector.broadcast %3 : vector<1x32xf32> to vector<16x32xf32>
    %5 = arith.addf %2, %4 : vector<16x32xf32>
    %c0_5 = arith.constant 0 : index
    %c0_6 = arith.constant 0 : index
    %6 = vector.load %arg4[%c0_5, %c0_6] : memref<16x32xf32, #tpu.memory_space<vmem>>, vector<16x32xf32>
    tpu.vector_store %arg4[%c0_5, %c0_6], %5 {strides = array<i32>} : memref<16x32xf32, #tpu.memory_space<vmem>>, vector<16x32xf32>,
    return
  }
  func.func @transform_0(%arg0: i32) -> (i32, i32) {
    %c0_i32 = arith.constant 0 : i32
    %c0_i32_0 = arith.constant 0 : i32
    return %arg0, %c0_i32 : i32, i32
  }
  func.func @transform_1(%arg0: i32) -> (i32, i32) {
    %c0_i32 = arith.constant 0 : i32
    %c0_i32_0 = arith.constant 0 : i32
    %c0_i32_1 = arith.constant 0 : i32
    return %c0_i32, %c0_i32_0 : i32, i32
  }
  func.func @transform_2(%arg0: i32) -> (i32, i32) {
    %c0_i32 = arith.constant 0 : i32
    %c0_i32_0 = arith.constant 0 : i32
    %c0_i32_1 = arith.constant 0 : i32
    return %c0_i32, %c0_i32_0 : i32, i32
  }
  func.func @transform_3(%arg0: i32) -> (i32, i32) {
    %c0_i32 = arith.constant 0 : i32
    %c0_i32_0 = arith.constant 0 : i32
    return %arg0, %c0_i32 : i32, i32
  }
}

module attributes {stable_mosaic.version = 11 : i64} {
  func.func @_addnorm_kernel(%arg0: i32, %arg1: memref<16x32xf32, #tpu.memory_space<vmem>>, %arg2: memref<16x32xf32, #tpu.memory_space<vmem>>, %arg3: memref<1x32xf32, #tpu.memory_space<vmem>>, %arg4: memref<1x32xf32, #tpu.memory_space<vmem>>, %arg5: memref<16x32xf32, #tpu.memory_space<vmem>>) attributes {dimension_semantics = [#tpu.dimension_semantics<parallel>], iteration_bounds = array<i64: 1>, scalar_prefetch = 0 : i64, scratch_operands = 0 : i64, tpu.core_type = #tpu.core_type<tc>, window_params = [{transform_indices = @transform_0, window_bounds = array<i64: 16, 32>}, {transform_indices = @transform_1, window_bounds = array<i64: 16, 32>}, {pipeline_mode = #tpu.pipeline_mode<synchronous>, transform_indices = @transform_2, window_bounds = array<i64: 1, 32>}, {pipeline_mode = #tpu.pipeline_mode<synchronous>, transform_indices = @transform_3, window_bounds = array<i64: 1, 32>}, {transform_indices = @transform_4, window_bounds = array<i64: 16, 32>}]} {
    %c0 = arith.constant 0 : index
    %c0_0 = arith.constant 0 : index
    %0 = vector.load %arg1[%c0, %c0_0] : memref<16x32xf32, #tpu.memory_space<vmem>>, vector<16x32xf32>
    %c0_1 = arith.constant 0 : index
    %c0_2 = arith.constant 0 : index
    %1 = vector.load %arg2[%c0_1, %c0_2] : memref<16x32xf32, #tpu.memory_space<vmem>>, vector<16x32xf32>
    %2 = arith.addf %0, %1 : vector<16x32xf32>
    %cst = arith.constant dense<0.000000e+00> : vector<16xf32>
    %3 = vector.multi_reduction <add>, %2, %cst [1] : vector<16x32xf32> to vector<16xf32>
    %4 = vector.shape_cast %3 : vector<16xf32> to vector<16x1xf32>
    %cst_3 = arith.constant 3.200000e+01 : f32
    %5 = vector.broadcast %cst_3 : f32 to vector<16x1xf32>
    %6 = arith.divf %4, %5 : vector<16x1xf32>
    %7 = vector.broadcast %6 : vector<16x1xf32> to vector<16x32xf32>
    %8 = arith.subf %2, %7 : vector<16x32xf32>
    %9 = arith.mulf %8, %8 : vector<16x32xf32>
    %cst_4 = arith.constant dense<0.000000e+00> : vector<16xf32>
    %10 = vector.multi_reduction <add>, %9, %cst_4 [1] : vector<16x32xf32> to vector<16xf32>
    %11 = vector.shape_cast %10 : vector<16xf32> to vector<16x1xf32>
    %cst_5 = arith.constant 3.200000e+01 : f32
    %12 = vector.broadcast %cst_5 : f32 to vector<16x1xf32>
    %13 = arith.divf %11, %12 : vector<16x1xf32>
    %cst_6 = arith.constant 9.99999974E-6 : f32
    %14 = vector.broadcast %cst_6 : f32 to vector<16x1xf32>
    %15 = arith.addf %13, %14 : vector<16x1xf32>
    %16 = math.rsqrt %15 : vector<16x1xf32>
    %17 = vector.broadcast %16 : vector<16x1xf32> to vector<16x32xf32>
    %18 = arith.mulf %8, %17 : vector<16x32xf32>
    %c0_7 = arith.constant 0 : index
    %c0_8 = arith.constant 0 : index
    %19 = vector.load %arg3[%c0_7, %c0_8] : memref<1x32xf32, #tpu.memory_space<vmem>>, vector<1x32xf32>
    %20 = vector.broadcast %19 : vector<1x32xf32> to vector<16x32xf32>
    %21 = arith.mulf %18, %20 : vector<16x32xf32>
    %c0_9 = arith.constant 0 : index
    %c0_10 = arith.constant 0 : index
    %22 = vector.load %arg4[%c0_9, %c0_10] : memref<1x32xf32, #tpu.memory_space<vmem>>, vector<1x32xf32>
    %23 = vector.broadcast %22 : vector<1x32xf32> to vector<16x32xf32>
    %24 = arith.addf %21, %23 : vector<16x32xf32>
    %c0_11 = arith.constant 0 : index
    %c0_12 = arith.constant 0 : index
    %25 = vector.load %arg5[%c0_11, %c0_12] : memref<16x32xf32, #tpu.memory_space<vmem>>, vector<16x32xf32>
    tpu.vector_store %arg5[%c0_11, %c0_12], %24 {strides = array<i32>} : memref<16x32xf32, #tpu.memory_space<vmem>>, vector<16x32xf32>,
    return
  }
  func.func @transform_0(%arg0: i32) -> (i32, i32) {
    %c0_i32 = arith.constant 0 : i32
    %c0_i32_0 = arith.constant 0 : i32
    return %arg0, %c0_i32 : i32, i32
  }
  func.func @transform_1(%arg0: i32) -> (i32, i32) {
    %c0_i32 = arith.constant 0 : i32
    %c0_i32_0 = arith.constant 0 : i32
    return %arg0, %c0_i32 : i32, i32
  }
  func.func @transform_2(%arg0: i32) -> (i32, i32) {
    %c0_i32 = arith.constant 0 : i32
    %c0_i32_0 = arith.constant 0 : i32
    %c0_i32_1 = arith.constant 0 : i32
    return %c0_i32, %c0_i32_0 : i32, i32
  }
  func.func @transform_3(%arg0: i32) -> (i32, i32) {
    %c0_i32 = arith.constant 0 : i32
    %c0_i32_0 = arith.constant 0 : i32
    %c0_i32_1 = arith.constant 0 : i32
    return %c0_i32, %c0_i32_0 : i32, i32
  }
  func.func @transform_4(%arg0: i32) -> (i32, i32) {
    %c0_i32 = arith.constant 0 : i32
    %c0_i32_0 = arith.constant 0 : i32
    return %arg0, %c0_i32 : i32, i32
  }
}

module attributes {stable_mosaic.version = 11 : i64} {
  func.func @_attention_kernel(%arg0: i32, %arg1: memref<8x8x8xf32, #tpu.memory_space<vmem>>, %arg2: memref<8x8x8xf32, #tpu.memory_space<vmem>>, %arg3: memref<8x8x8xf32, #tpu.memory_space<vmem>>, %arg4: memref<8x8xf32, #tpu.memory_space<vmem>>, %arg5: memref<8x8x8xf32, #tpu.memory_space<vmem>>) attributes {dimension_semantics = [#tpu.dimension_semantics<parallel>], iteration_bounds = array<i64: 1>, scalar_prefetch = 0 : i64, scratch_operands = 0 : i64, tpu.core_type = #tpu.core_type<tc>, window_params = [{transform_indices = @transform_0, window_bounds = array<i64: 8, 8, 8>}, {transform_indices = @transform_1, window_bounds = array<i64: 8, 8, 8>}, {transform_indices = @transform_2, window_bounds = array<i64: 8, 8, 8>}, {pipeline_mode = #tpu.pipeline_mode<synchronous>, transform_indices = @transform_3, window_bounds = array<i64: 8, 8>}, {transform_indices = @transform_4, window_bounds = array<i64: 8, 8, 8>}]} {
    %c0 = arith.constant 0 : index
    %c0_0 = arith.constant 0 : index
    %c0_1 = arith.constant 0 : index
    %0 = vector.load %arg1[%c0, %c0_0, %c0_1] : memref<8x8x8xf32, #tpu.memory_space<vmem>>, vector<8x8x8xf32>
    %c0_2 = arith.constant 0 : index
    %c0_3 = arith.constant 0 : index
    %c0_4 = arith.constant 0 : index
    %1 = vector.load %arg2[%c0_2, %c0_3, %c0_4] : memref<8x8x8xf32, #tpu.memory_space<vmem>>, vector<8x8x8xf32>
    %c0_5 = arith.constant 0 : index
    %c0_6 = arith.constant 0 : index
    %c0_7 = arith.constant 0 : index
    %2 = vector.load %arg3[%c0_5, %c0_6, %c0_7] : memref<8x8x8xf32, #tpu.memory_space<vmem>>, vector<8x8x8xf32>
    "tpu.trace_start"() <{level = 10 : i32, message = "bqd,bkd->bqk"}> : () -> ()
    %cst = arith.constant dense<0.000000e+00> : vector<8x8x8xf32>
    %3 = tpu.matmul %0, %1, %cst {dimension_numbers = #tpu.dot_dimension_numbers<[2], [2], [1], [1], [0, 0, 0, 1, 1, 1], [0], [0]>} : vector<8x8x8xf32>, vector<8x8x8xf32>, vector<8x8x8xf32> -> vector<8x8x8xf32>
    "tpu.trace_stop"() : () -> ()
    %cst_8 = arith.constant 0.353553385 : f32
    %4 = vector.broadcast %cst_8 : f32 to vector<8x8x8xf32>
    %5 = arith.mulf %3, %4 : vector<8x8x8xf32>
    %c0_9 = arith.constant 0 : index
    %c0_10 = arith.constant 0 : index
    %6 = vector.load %arg4[%c0_9, %c0_10] : memref<8x8xf32, #tpu.memory_space<vmem>>, vector<8x8xf32>
    %7 = vector.shape_cast %6 : vector<8x8xf32> to vector<1x8x8xf32>
    %8 = vector.broadcast %7 : vector<1x8x8xf32> to vector<8x8x8xf32>
    %9 = arith.addf %5, %8 : vector<8x8x8xf32>
    %cst_11 = arith.constant dense<0xFF800000> : vector<8x8xf32>
    %10 = vector.multi_reduction <maximumf>, %9, %cst_11 [2] : vector<8x8x8xf32> to vector<8x8xf32>
    %11 = vector.shape_cast %10 : vector<8x8xf32> to vector<8x8x1xf32>
    %12 = vector.broadcast %11 : vector<8x8x1xf32> to vector<8x8x8xf32>
    %13 = arith.subf %9, %12 : vector<8x8x8xf32>
    %14 = math.exp %13 : vector<8x8x8xf32>
    %cst_12 = arith.constant dense<0.000000e+00> : vector<8x8xf32>
    %15 = vector.multi_reduction <add>, %14, %cst_12 [2] : vector<8x8x8xf32> to vector<8x8xf32>
    %16 = vector.shape_cast %15 : vector<8x8xf32> to vector<8x8x1xf32>
    %17 = vector.broadcast %16 : vector<8x8x1xf32> to vector<8x8x8xf32>
    %18 = arith.divf %14, %17 : vector<8x8x8xf32>
    "tpu.trace_start"() <{level = 10 : i32, message = "bqk,bkd->bqd"}> : () -> ()
    %cst_13 = arith.constant dense<0.000000e+00> : vector<8x8x8xf32>
    %19 = tpu.matmul %18, %2, %cst_13 {dimension_numbers = #tpu.dot_dimension_numbers<[2], [1], [1], [2], [0, 0, 0, 1, 1, 2], [0], [0]>} : vector<8x8x8xf32>, vector<8x8x8xf32>, vector<8x8x8xf32> -> vector<8x8x8xf32>
    "tpu.trace_stop"() : () -> ()
    %c0_14 = arith.constant 0 : index
    %c0_15 = arith.constant 0 : index
    %c0_16 = arith.constant 0 : index
    %20 = vector.load %arg5[%c0_14, %c0_15, %c0_16] : memref<8x8x8xf32, #tpu.memory_space<vmem>>, vector<8x8x8xf32>
    tpu.vector_store %arg5[%c0_14, %c0_15, %c0_16], %19 {strides = array<i32>} : memref<8x8x8xf32, #tpu.memory_space<vmem>>, vector<8x8x8xf32>,
    return
  }
  func.func @transform_0(%arg0: i32) -> (i32, i32, i32) {
    %c0_i32 = arith.constant 0 : i32
    %c0_i32_0 = arith.constant 0 : i32
    %c0_i32_1 = arith.constant 0 : i32
    return %arg0, %c0_i32, %c0_i32_0 : i32, i32, i32
  }
  func.func @transform_1(%arg0: i32) -> (i32, i32, i32) {
    %c0_i32 = arith.constant 0 : i32
    %c0_i32_0 = arith.constant 0 : i32
    %c0_i32_1 = arith.constant 0 : i32
    return %arg0, %c0_i32, %c0_i32_0 : i32, i32, i32
  }
  func.func @transform_2(%arg0: i32) -> (i32, i32, i32) {
    %c0_i32 = arith.constant 0 : i32
    %c0_i32_0 = arith.constant 0 : i32
    %c0_i32_1 = arith.constant 0 : i32
    return %arg0, %c0_i32, %c0_i32_0 : i32, i32, i32
  }
  func.func @transform_3(%arg0: i32) -> (i32, i32) {
    %c0_i32 = arith.constant 0 : i32
    %c0_i32_0 = arith.constant 0 : i32
    %c0_i32_1 = arith.constant 0 : i32
    return %c0_i32, %c0_i32_0 : i32, i32
  }
  func.func @transform_4(%arg0: i32) -> (i32, i32, i32) {
    %c0_i32 = arith.constant 0 : i32
    %c0_i32_0 = arith.constant 0 : i32
    %c0_i32_1 = arith.constant 0 : i32
    return %arg0, %c0_i32, %c0_i32_0 : i32, i32, i32
  }
}

module attributes {stable_mosaic.version = 11 : i64} {
  func.func @_ffn_kernel(%arg0: i32, %arg1: memref<16x32xf32, #tpu.memory_space<vmem>>, %arg2: memref<32x64xf32, #tpu.memory_space<vmem>>, %arg3: memref<1x64xf32, #tpu.memory_space<vmem>>, %arg4: memref<64x32xf32, #tpu.memory_space<vmem>>, %arg5: memref<1x32xf32, #tpu.memory_space<vmem>>, %arg6: memref<16x32xf32, #tpu.memory_space<vmem>>) attributes {dimension_semantics = [#tpu.dimension_semantics<parallel>], iteration_bounds = array<i64: 1>, scalar_prefetch = 0 : i64, scratch_operands = 0 : i64, tpu.core_type = #tpu.core_type<tc>, window_params = [{transform_indices = @transform_0, window_bounds = array<i64: 16, 32>}, {pipeline_mode = #tpu.pipeline_mode<synchronous>, transform_indices = @transform_1, window_bounds = array<i64: 32, 64>}, {pipeline_mode = #tpu.pipeline_mode<synchronous>, transform_indices = @transform_2, window_bounds = array<i64: 1, 64>}, {pipeline_mode = #tpu.pipeline_mode<synchronous>, transform_indices = @transform_3, window_bounds = array<i64: 64, 32>}, {pipeline_mode = #tpu.pipeline_mode<synchronous>, transform_indices = @transform_4, window_bounds = array<i64: 1, 32>}, {transform_indices = @transform_5, window_bounds = array<i64: 16, 32>}]} {
    %c0 = arith.constant 0 : index
    %c0_0 = arith.constant 0 : index
    %0 = vector.load %arg1[%c0, %c0_0] : memref<16x32xf32, #tpu.memory_space<vmem>>, vector<16x32xf32>
    %c0_1 = arith.constant 0 : index
    %c0_2 = arith.constant 0 : index
    %1 = vector.load %arg2[%c0_1, %c0_2] : memref<32x64xf32, #tpu.memory_space<vmem>>, vector<32x64xf32>
    %cst = arith.constant dense<0.000000e+00> : vector<16x64xf32>
    %2 = tpu.matmul %0, %1, %cst {dimension_numbers = #tpu.dot_dimension_numbers<[1], [0], [0], [1], [0, 0, 1, 1], [], []>} : vector<16x32xf32>, vector<32x64xf32>, vector<16x64xf32> -> vector<16x64xf32>
    %c0_3 = arith.constant 0 : index
    %c0_4 = arith.constant 0 : index
    %3 = vector.load %arg3[%c0_3, %c0_4] : memref<1x64xf32, #tpu.memory_space<vmem>>, vector<1x64xf32>
    %4 = vector.broadcast %3 : vector<1x64xf32> to vector<16x64xf32>
    %5 = arith.addf %2, %4 : vector<16x64xf32>
    %cst_5 = arith.constant 0.000000e+00 : f32
    %6 = vector.broadcast %cst_5 : f32 to vector<16x64xf32>
    %7 = arith.maximumf %5, %6 : vector<16x64xf32>
    %c0_6 = arith.constant 0 : index
    %c0_7 = arith.constant 0 : index
    %8 = vector.load %arg4[%c0_6, %c0_7] : memref<64x32xf32, #tpu.memory_space<vmem>>, vector<64x32xf32>
    %cst_8 = arith.constant dense<0.000000e+00> : vector<16x32xf32>
    %9 = tpu.matmul %7, %8, %cst_8 {dimension_numbers = #tpu.dot_dimension_numbers<[1], [0], [0], [1], [0, 0, 1, 1], [], []>} : vector<16x64xf32>, vector<64x32xf32>, vector<16x32xf32> -> vector<16x32xf32>
    %c0_9 = arith.constant 0 : index
    %c0_10 = arith.constant 0 : index
    %10 = vector.load %arg5[%c0_9, %c0_10] : memref<1x32xf32, #tpu.memory_space<vmem>>, vector<1x32xf32>
    %11 = vector.broadcast %10 : vector<1x32xf32> to vector<16x32xf32>
    %12 = arith.addf %9, %11 : vector<16x32xf32>
    %c0_11 = arith.constant 0 : index
    %c0_12 = arith.constant 0 : index
    %13 = vector.load %arg6[%c0_11, %c0_12] : memref<16x32xf32, #tpu.memory_space<vmem>>, vector<16x32xf32>
    tpu.vector_store %arg6[%c0_11, %c0_12], %12 {strides = array<i32>} : memref<16x32xf32, #tpu.memory_space<vmem>>, vector<16x32xf32>,
    return
  }
  func.func @transform_0(%arg0: i32) -> (i32, i32) {
    %c0_i32 = arith.constant 0 : i32
    %c0_i32_0 = arith.constant 0 : i32
    return %arg0, %c0_i32 : i32, i32
  }
  func.func @transform_1(%arg0: i32) -> (i32, i32) {
    %c0_i32 = arith.constant 0 : i32
    %c0_i32_0 = arith.constant 0 : i32
    %c0_i32_1 = arith.constant 0 : i32
    return %c0_i32, %c0_i32_0 : i32, i32
  }
  func.func @transform_2(%arg0: i32) -> (i32, i32) {
    %c0_i32 = arith.constant 0 : i32
    %c0_i32_0 = arith.constant 0 : i32
    %c0_i32_1 = arith.constant 0 : i32
    return %c0_i32, %c0_i32_0 : i32, i32
  }
  func.func @transform_3(%arg0: i32) -> (i32, i32) {
    %c0_i32 = arith.constant 0 : i32
    %c0_i32_0 = arith.constant 0 : i32
    %c0_i32_1 = arith.constant 0 : i32
    return %c0_i32, %c0_i32_0 : i32, i32
  }
  func.func @transform_4(%arg0: i32) -> (i32, i32) {
    %c0_i32 = arith.constant 0 : i32
    %c0_i32_0 = arith.constant 0 : i32
    %c0_i32_1 = arith.constant 0 : i32
    return %c0_i32, %c0_i32_0 : i32, i32
  }
  func.func @transform_5(%arg0: i32) -> (i32, i32) {
    %c0_i32 = arith.constant 0 : i32
    %c0_i32_0 = arith.constant 0 : i32
    return %arg0, %c0_i32 : i32, i32
  }
}

module attributes {stable_mosaic.version = 11 : i64} {
  func.func @_addnorm_kernel(%arg0: i32, %arg1: memref<16x32xf32, #tpu.memory_space<vmem>>, %arg2: memref<16x32xf32, #tpu.memory_space<vmem>>, %arg3: memref<1x32xf32, #tpu.memory_space<vmem>>, %arg4: memref<1x32xf32, #tpu.memory_space<vmem>>, %arg5: memref<16x32xf32, #tpu.memory_space<vmem>>) attributes {dimension_semantics = [#tpu.dimension_semantics<parallel>], iteration_bounds = array<i64: 1>, scalar_prefetch = 0 : i64, scratch_operands = 0 : i64, tpu.core_type = #tpu.core_type<tc>, window_params = [{transform_indices = @transform_0, window_bounds = array<i64: 16, 32>}, {transform_indices = @transform_1, window_bounds = array<i64: 16, 32>}, {pipeline_mode = #tpu.pipeline_mode<synchronous>, transform_indices = @transform_2, window_bounds = array<i64: 1, 32>}, {pipeline_mode = #tpu.pipeline_mode<synchronous>, transform_indices = @transform_3, window_bounds = array<i64: 1, 32>}, {transform_indices = @transform_4, window_bounds = array<i64: 16, 32>}]} {
    %c0 = arith.constant 0 : index
    %c0_0 = arith.constant 0 : index
    %0 = vector.load %arg1[%c0, %c0_0] : memref<16x32xf32, #tpu.memory_space<vmem>>, vector<16x32xf32>
    %c0_1 = arith.constant 0 : index
    %c0_2 = arith.constant 0 : index
    %1 = vector.load %arg2[%c0_1, %c0_2] : memref<16x32xf32, #tpu.memory_space<vmem>>, vector<16x32xf32>
    %2 = arith.addf %0, %1 : vector<16x32xf32>
    %cst = arith.constant dense<0.000000e+00> : vector<16xf32>
    %3 = vector.multi_reduction <add>, %2, %cst [1] : vector<16x32xf32> to vector<16xf32>
    %4 = vector.shape_cast %3 : vector<16xf32> to vector<16x1xf32>
    %cst_3 = arith.constant 3.200000e+01 : f32
    %5 = vector.broadcast %cst_3 : f32 to vector<16x1xf32>
    %6 = arith.divf %4, %5 : vector<16x1xf32>
    %7 = vector.broadcast %6 : vector<16x1xf32> to vector<16x32xf32>
    %8 = arith.subf %2, %7 : vector<16x32xf32>
    %9 = arith.mulf %8, %8 : vector<16x32xf32>
    %cst_4 = arith.constant dense<0.000000e+00> : vector<16xf32>
    %10 = vector.multi_reduction <add>, %9, %cst_4 [1] : vector<16x32xf32> to vector<16xf32>
    %11 = vector.shape_cast %10 : vector<16xf32> to vector<16x1xf32>
    %cst_5 = arith.constant 3.200000e+01 : f32
    %12 = vector.broadcast %cst_5 : f32 to vector<16x1xf32>
    %13 = arith.divf %11, %12 : vector<16x1xf32>
    %cst_6 = arith.constant 9.99999974E-6 : f32
    %14 = vector.broadcast %cst_6 : f32 to vector<16x1xf32>
    %15 = arith.addf %13, %14 : vector<16x1xf32>
    %16 = math.rsqrt %15 : vector<16x1xf32>
    %17 = vector.broadcast %16 : vector<16x1xf32> to vector<16x32xf32>
    %18 = arith.mulf %8, %17 : vector<16x32xf32>
    %c0_7 = arith.constant 0 : index
    %c0_8 = arith.constant 0 : index
    %19 = vector.load %arg3[%c0_7, %c0_8] : memref<1x32xf32, #tpu.memory_space<vmem>>, vector<1x32xf32>
    %20 = vector.broadcast %19 : vector<1x32xf32> to vector<16x32xf32>
    %21 = arith.mulf %18, %20 : vector<16x32xf32>
    %c0_9 = arith.constant 0 : index
    %c0_10 = arith.constant 0 : index
    %22 = vector.load %arg4[%c0_9, %c0_10] : memref<1x32xf32, #tpu.memory_space<vmem>>, vector<1x32xf32>
    %23 = vector.broadcast %22 : vector<1x32xf32> to vector<16x32xf32>
    %24 = arith.addf %21, %23 : vector<16x32xf32>
    %c0_11 = arith.constant 0 : index
    %c0_12 = arith.constant 0 : index
    %25 = vector.load %arg5[%c0_11, %c0_12] : memref<16x32xf32, #tpu.memory_space<vmem>>, vector<16x32xf32>
    tpu.vector_store %arg5[%c0_11, %c0_12], %24 {strides = array<i32>} : memref<16x32xf32, #tpu.memory_space<vmem>>, vector<16x32xf32>,
    return
  }
  func.func @transform_0(%arg0: i32) -> (i32, i32) {
    %c0_i32 = arith.constant 0 : i32
    %c0_i32_0 = arith.constant 0 : i32
    return %arg0, %c0_i32 : i32, i32
  }
  func.func @transform_1(%arg0: i32) -> (i32, i32) {
    %c0_i32 = arith.constant 0 : i32
    %c0_i32_0 = arith.constant 0 : i32
    return %arg0, %c0_i32 : i32, i32
  }
  func.func @transform_2(%arg0: i32) -> (i32, i32) {
    %c0_i32 = arith.constant 0 : i32
    %c0_i32_0 = arith.constant 0 : i32
    %c0_i32_1 = arith.constant 0 : i32
    return %c0_i32, %c0_i32_0 : i32, i32
  }
  func.func @transform_3(%arg0: i32) -> (i32, i32) {
    %c0_i32 = arith.constant 0 : i32
    %c0_i32_0 = arith.constant 0 : i32
    %c0_i32_1 = arith.constant 0 : i32
    return %c0_i32, %c0_i32_0 : i32, i32
  }
  func.func @transform_4(%arg0: i32) -> (i32, i32) {
    %c0_i32 = arith.constant 0 : i32
    %c0_i32_0 = arith.constant 0 : i32
    return %arg0, %c0_i32 : i32, i32
  }
}

</mosaic_0001>

<bundles_post_ra>
// kernel: transformer_forward.60
= control target key start
LH: loop header
LB: loop body
LE: loop exit
PB: predicated region body
PF: predicated region fallthrough
CT: control target
= control target key end

     0   :  { %vm24_vm0 = vcmask 261120   ;;  %s114_s1 = inlined_call_operand.vmem [shape: f32[32,32], index: 1, kind: input, shape index: {}]   ;;  %s115_s2 = inlined_call_operand.vmem [shape: f32[1,32], index: 2, kind: input, shape index: {}]   ;;  %s116_s0 = inlined_call_operand.vmem [shape: f32[16,32], index: 0, kind: input, shape index: {}]   ;;  %s117_s3 = inlined_call_operand.vmem [shape: f32[16,32], index: 3, kind: output, shape index: {}]  }
   0x1   :  { %v19_v0 = vld [vmem:[%s114_s1 + $0x18] sm:$0xff]  ;;  %v18_v1 = vld [vmem:[%s114_s1 + $0x10] sm:$0xff]  ;;  %v17_v2 = vld [vmem:[%s114_s1 + $0x8] sm:$0xff] }
   0x2   :  { %43 = vmatpush.msra.mxu0 %v19_v0  ;;  %62 = vmatpush.msra.mxu1 %v19_v0  ;;  %v16_v3 = vld [vmem:[%s114_s1] sm:$0xff]  ;;  %v15_v5 = vld [vmem:[%s116_s0 + $0x8] sm:$0xff] }
   0x3   :  { %v14_v4 = vld [vmem:[%s116_s0] sm:$0xff] }
   0x4   :  { %44 = vmatpush.msra.mxu0 %v18_v1  ;;  %63 = vmatpush.msra.mxu1 %v18_v1  ;;  %v66_v6 = vld [vmem:[%s115_s2] ss:$0 sm:$0xff] }
   0x6   :  { %45 = vmatpush.msra.mxu0 %v17_v2  ;;  %64 = vmatpush.msra.mxu1 %v17_v2 }
   0x8   :  { %46 = vmatpush.msra.mxu0 %v16_v3  ;;  %65 = vmatpush.msra.mxu1 %v16_v3 }
   0x9   :  { %60 = vmatmul.msk.f32.vlgmr.msra.gmra.mxu0 %vm24_vm0, %v14_v4  ;;  %61 = vmatmul.msk.f32.vlgmr.msra.gmra.mxu1 %vm24_vm0, %v15_v5 }
  0x86   :  { %v48_v7 = vpop.f32.mrf.mxu0  ;;  %v51_v8 = vpop.f32.mrf.mxu1 }
  0x87   :  { %v49_v9 = vadd.f32 %v66_v6, %v48_v7  ;;  %v52_v10 = vadd.f32 %v66_v6, %v51_v8 }
  0x89   :  { %54 = vst.msk [vmem:[%s117_s3] sm:$0xff] %vm24_vm0, %v49_v9 }
  0x8a   :  { %55 = vst.msk [vmem:[%s117_s3 + $0x8] sm:$0xff] %vm24_vm0, %v52_v10 }

// kernel: transformer_forward.65
= control target key start
LH: loop header
LB: loop body
LE: loop exit
PB: predicated region body
PF: predicated region fallthrough
CT: control target
= control target key end

     0   :  { %vm23_vm0 = vcmask 261120   ;;  %v102_v8 = vmov 32.0   ;;  %s158_s0 = inlined_call_operand.vmem [shape: f32[16,32], index: 0, kind: input, shape index: {}]   ;;  %s159_s1 = inlined_call_operand.vmem [shape: f32[16,32], index: 1, kind: input, shape index: {}]   ;;  %s160_s2 = inlined_call_operand.vmem [shape: f32[1,32], index: 2, kind: input, shape index: {}]   ;;  %s161_s3 = inlined_call_operand.vmem [shape: f32[1,32], index: 3, kind: input, shape index: {}]   ;;  %s162_s4 = inlined_call_operand.vmem [shape: f32[16,32], index: 4, kind: output, shape index: {}]  }
   0x1   :  { %v17_v0 = vld [vmem:[%s158_s0] sm:$0xff]  ;;  %v18_v3 = vld [vmem:[%s158_s0 + $0x8] sm:$0xff]  ;;  %96 = vrcp.f32 %v102_v8 }
   0x2   :  { %v19_v1 = vld [vmem:[%s159_s1] sm:$0xff]  ;;  %v20_v4 = vld [vmem:[%s159_s1 + $0x8] sm:$0xff] }
   0x3   :  { %v21_v2 = vadd.f32 %v19_v1, %v17_v0  ;;  %v22_v6 = vadd.f32 %v20_v4, %v18_v3  ;;  %v94_v39 = vld [vmem:[%s160_s2] ss:$0 sm:$0xff] }
   0x4   :  { %v95_v42 = vld [vmem:[%s161_s3] ss:$0 sm:$0xff] }
   0x5   :  { %v24_v5 = vsel %vm23_vm0, %v21_v2, 0.0  ;;  %v27_v7 = vsel %vm23_vm0, %v22_v6, 0.0 }
   0x6   :  { %25 = vadd.xlane.f32.xlu0 %v24_v5 }
   0x7   :  { %v97_v9 = vpop.eup %96 }
   0x8   :  { %v31_v10 = vmul.f32 32.0, %v97_v9  ;;  %vm35_vm1 = vweird.f32 %v97_v9 }
   0xa   :  { %v32_v11 = vsub.f32 1.0, %v31_v10 }
   0xc   :  { %v33_v12 = vmul.f32 %v97_v9, %v32_v11 }
   0xe   :  { %28 = vadd.xlane.f32.xlu0 %v27_v7  ;;  %v34_v13 = vadd.f32 %v97_v9, %v33_v12 }
  0x10   :  { %v36_v14 = vsel %vm35_vm1, %v97_v9, %v34_v13 }
  0x79   :  { %v26_v15 = vpop.xlane.xlu0 %25 }
  0x7a   :  { %v37_v16 = vmul.f32 %v36_v14, %v26_v15 }
  0x7c   :  { %v39_v17 = vsub.f32 %v21_v2, %v37_v16 }
  0x7e   :  { %v41_v18 = vmul.f32 %v39_v17, %v39_v17 }
  0x80   :  { %v43_v19 = vsel %vm23_vm0, %v41_v18, 0.0 }
  0x81   :  { %44 = vadd.xlane.f32.xlu1 %v43_v19  ;;  %v29_v20 = vpop.xlane.xlu0 %28 }
  0x82   :  { %v38_v21 = vmul.f32 %v36_v14, %v29_v20 }
  0x84   :  { %v40_v22 = vsub.f32 %v22_v6, %v38_v21 }
  0x86   :  { %v42_v23 = vmul.f32 %v40_v22, %v40_v22 }
  0x88   :  { %v46_v24 = vsel %vm23_vm0, %v42_v23, 0.0 }
  0x89   :  { %47 = vadd.xlane.f32.xlu1 %v46_v24 }
  0xf4   :  { %v45_v25 = vpop.xlane.xlu1 %44 }
  0xf5   :  { %v49_v26 = vmul.f32 %v45_v25, %v36_v14 }
  0xf7   :  { %v51_v27 = vadd.f32 1e-05, %v49_v26 }
  0xf9   :  { %98 = vrsqrt.f32 %v51_v27  ;;  %vm59_vm3 = vweird.f32 %v51_v27 }
  0xfc   :  { %v48_v28 = vpop.xlane.xlu1 %47 }
  0xfd   :  { %v50_v29 = vmul.f32 %v48_v28, %v36_v14 }
  0xff   :  { %v99_v30 = vpop.eup %98  ;;  %v52_v31 = vadd.f32 1e-05, %v50_v29 }
 0x100   :  { %v54_v32 = vmul.f32 %v99_v30, %v51_v27  ;;  %vm60_vm2 = vweird.f32 %v99_v30 }
 0x101   :  { %100 = vrsqrt.f32 %v52_v31  ;;  %vm61_vm4 = vmor %vm59_vm3, %vm60_vm2  ;;  %vm69_vm6 = vweird.f32 %v52_v31 }
 0x102   :  { %v55_v33 = vmul.f32 %v99_v30, %v54_v32 }
 0x104   :  { %v56_v34 = vmul.f32 0.5, %v55_v33 }
 0x106   :  { %v57_v35 = vsub.f32 1.5, %v56_v34 }
 0x107   :  { %v101_v36 = vpop.eup %100 }
 0x108   :  { %v58_v37 = vmul.f32 %v99_v30, %v57_v35  ;;  %v64_v38 = vmul.f32 %v101_v36, %v52_v31  ;;  %vm70_vm5 = vweird.f32 %v101_v36 }
 0x109   :  { %vm71_vm7 = vmor %vm69_vm6, %vm70_vm5 }
 0x10a   :  { %v62_v40 = vsel %vm61_vm4, %v99_v30, %v58_v37  ;;  %v65_v41 = vmul.f32 %v101_v36, %v64_v38 }
 0x10b   :  { %v73_v43 = vmul.f32 %v62_v40, %v39_v17 }
 0x10c   :  { %v66_v44 = vmul.f32 0.5, %v65_v41 }
 0x10d   :  { %v79_v45 = vmul.f32 %v94_v39, %v73_v43 }
 0x10e   :  { %v67_v46 = vsub.f32 1.5, %v66_v44 }
 0x10f   :  { %v85_v47 = vadd.f32 %v95_v42, %v79_v45 }
 0x110   :  { %v68_v48 = vmul.f32 %v101_v36, %v67_v46 }
 0x111   :  { %87 = vst.msk [vmem:[%s162_s4] sm:$0xff] %vm23_vm0, %v85_v47 }
 0x112   :  { %v72_v49 = vsel %vm71_vm7, %v101_v36, %v68_v48 }
 0x113   :  { %v74_v50 = vmul.f32 %v72_v49, %v40_v22 }
 0x115   :  { %v80_v51 = vmul.f32 %v94_v39, %v74_v50 }
 0x117   :  { %v86_v52 = vadd.f32 %v95_v42, %v80_v51 }
 0x119   :  { %88 = vst.msk [vmem:[%s162_s4 + $0x8] sm:$0xff] %vm23_vm0, %v86_v52 }

// kernel: transformer_forward.63
= control target key start
LH: loop header
LB: loop body
LE: loop exit
PB: predicated region body
PF: predicated region fallthrough
CT: control target
= control target key end

     0   :  { %vm41_vm0 = vcmask 64512   ;;  %s960_s1 = inlined_call_operand.vmem [shape: f32[8,8,8], index: 1, kind: input, shape index: {}]   ;;  %s961_s0 = inlined_call_operand.vmem [shape: f32[8,8,8], index: 0, kind: input, shape index: {}]   ;;  %s962_s3 = inlined_call_operand.vmem [shape: f32[8,8], index: 3, kind: input, shape index: {}]   ;;  %s963_s2 = inlined_call_operand.vmem [shape: f32[8,8,8], index: 2, kind: input, shape index: {}]   ;;  %s964_s4 = inlined_call_operand.vmem [shape: f32[8,8,8], index: 4, kind: output, shape index: {}]  }
   0x1   :  { %v25_v0 = vld [vmem:[%s960_s1] sm:$0xff]  ;;  %v27_v1 = vld [vmem:[%s960_s1 + $0x10] sm:$0xff]  ;;  %v26_v5 = vld [vmem:[%s960_s1 + $0x8] sm:$0xff] }
   0x2   :  { %v17_v2 = vld [vmem:[%s961_s0] sm:$0xff]  ;;  %655 = vmatpush.xpose.msk.msra.mxu0 %vm41_vm0, %v25_v0  ;;  %659 = vmatpush.xpose.msk.msra.mxu2 %vm41_vm0, %v27_v1  ;;  %v19_v3 = vld [vmem:[%s961_s0 + $0x10] sm:$0xff]  ;;  %v28_v6 = vld [vmem:[%s960_s1 + $0x18] sm:$0xff] }
   0x3   :  { %v31_v4 = vld [vmem:[%s960_s1 + $0x30] sm:$0xff]  ;;  %657 = vmatpush.xpose.msk.msra.mxu1 %vm41_vm0, %v26_v5  ;;  %v18_v7 = vld [vmem:[%s961_s0 + $0x8] sm:$0xff]  ;;  %661 = vmatpush.xpose.msk.msra.mxu3 %vm41_vm0, %v28_v6  ;;  %v20_v8 = vld [vmem:[%s961_s0 + $0x18] sm:$0xff] }
   0x4   :  { %v32_v9 = vld [vmem:[%s960_s1 + $0x38] sm:$0xff]  ;;  %v30_v10 = vld [vmem:[%s960_s1 + $0x28] sm:$0xff]  ;;  %v29_v11 = vld [vmem:[%s960_s1 + $0x20] sm:$0xff] }
   0x5   :  { %656 = vmatmul.msk.f32.vlgmr.msra.gmra.mxu0 %vm41_vm0, %v17_v2  ;;  %660 = vmatmul.msk.f32.vlgmr.msra.gmra.mxu2 %vm41_vm0, %v19_v3  ;;  %v23_v12 = vld [vmem:[%s961_s0 + $0x30] sm:$0xff]  ;;  %v21_v13 = vld [vmem:[%s961_s0 + $0x20] sm:$0xff]  ;;  %v22_v14 = vld [vmem:[%s961_s0 + $0x28] sm:$0xff] }
   0x6   :  { %667 = vmatpush.xpose.msk.msrb.mxu2 %vm41_vm0, %v31_v4  ;;  %658 = vmatmul.msk.f32.vlgmr.msra.gmra.mxu1 %vm41_vm0, %v18_v7  ;;  %v24_v15 = vld [vmem:[%s961_s0 + $0x38] sm:$0xff]  ;;  %v258_v17 = vld [vmem:[%s962_s3] sm:$0xff] }
   0x7   :  { %669 = vmatpush.xpose.msk.msrb.mxu3 %vm41_vm0, %v32_v9  ;;  %665 = vmatpush.xpose.msk.msrb.mxu1 %vm41_vm0, %v30_v10 }
   0x8   :  { %662 = vmatmul.msk.f32.vlgmr.msra.gmra.mxu3 %vm41_vm0, %v20_v8  ;;  %663 = vmatpush.xpose.msk.msrb.mxu0 %vm41_vm0, %v29_v11 }
   0xd   :  { %668 = vmatmul.msk.f32.vlgmr.msrb.gmra.mxu2 %vm41_vm0, %v23_v12  ;;  %664 = vmatmul.msk.f32.vlgmr.msrb.gmra.mxu0 %vm41_vm0, %v21_v13 }
   0xe   :  { %666 = vmatmul.msk.f32.vlgmr.msrb.gmra.mxu1 %vm41_vm0, %v22_v14 }
  0x10   :  { %670 = vmatmul.msk.f32.vlgmr.msrb.gmra.mxu3 %vm41_vm0, %v24_v15 }
  0x82   :  { %v65_v16 = vpop.f32.mrf.mxu0 }
  0x83   :  { %v250_v18 = vmul.f32 0.35355338, %v65_v16  ;;  %v91_v19 = vpop.f32.mrf.mxu1 }
  0x84   :  { %v251_v21 = vmul.f32 0.35355338, %v91_v19 }
  0x85   :  { %v259_v20 = vadd.f32 %v258_v17, %v250_v18 }
  0x86   :  { %v260_v25 = vadd.f32 %v258_v17, %v251_v21 }
  0x87   :  { %v267_v22 = vsel %vm41_vm0, %v259_v20, -inf }
  0x88   :  { %v117_v23 = vpop.f32.mrf.mxu2  ;;  %268 = vmax.xlane.f32.xlu1 %v267_v22  ;;  %v270_v31 = vsel %vm41_vm0, %v260_v25, -inf }
  0x89   :  { %v252_v24 = vmul.f32 0.35355338, %v117_v23 }
  0x8a   :  { %v169_v35 = vpop.f32.mrf.mxu0 }
  0x8b   :  { %v143_v26 = vpop.f32.mrf.mxu3  ;;  %v261_v27 = vadd.f32 %v258_v17, %v252_v24  ;;  %v195_v29 = vpop.f32.mrf.mxu1  ;;  %v254_v42 = vmul.f32 0.35355338, %v169_v35 }
  0x8c   :  { %v253_v28 = vmul.f32 0.35355338, %v143_v26  ;;  %v255_v32 = vmul.f32 0.35355338, %v195_v29  ;;  %v35_v26 = vld [vmem:[%s963_s2 + $0x10] sm:$0xff]  ;;  %v36_v29 = vld [vmem:[%s963_s2 + $0x18] sm:$0xff] }
  0x8d   :  { %v273_v30 = vsel %vm41_vm0, %v261_v27, -inf  ;;  %v263_v46 = vadd.f32 %v258_v17, %v254_v42  ;;  %523 = vmatpush.msra.mxu2 %v35_v26  ;;  %546 = vmatpush.msra.mxu3 %v36_v29  ;;  %v39_v42 = vld [vmem:[%s963_s2 + $0x30] sm:$0xff] }
  0x8e   :  { %274 = vmax.xlane.f32.xlu0 %v273_v30  ;;  %v262_v33 = vadd.f32 %v258_v17, %v253_v28  ;;  %v264_v37 = vadd.f32 %v258_v17, %v255_v32  ;;  %v34_v30 = vld [vmem:[%s963_s2 + $0x8] sm:$0xff] }
  0x8f   :  { %v279_v48 = vsel %vm41_vm0, %v263_v46, -inf  ;;  %500 = vmatpush.msra.mxu1 %v34_v30  ;;  %615 = vmatpush.msrb.mxu2 %v39_v42 }
  0x90   :  { %v221_v34 = vpop.f32.mrf.mxu2  ;;  %271 = vmax.xlane.f32.xlu1 %v270_v31  ;;  %v276_v39 = vsel %vm41_vm0, %v262_v33, -inf  ;;  %v282_v44 = vsel %vm41_vm0, %v264_v37, -inf }
  0x91   :  { %v256_v36 = vmul.f32 0.35355338, %v221_v34 }
  0x93   :  { %v247_v38 = vpop.f32.mrf.mxu3  ;;  %v265_v40 = vadd.f32 %v258_v17, %v256_v36 }
  0x94   :  { %v257_v41 = vmul.f32 0.35355338, %v247_v38 }
  0x95   :  { %v285_v43 = vsel %vm41_vm0, %v265_v40, -inf }
  0x96   :  { %277 = vmax.xlane.f32.xlu0 %v276_v39  ;;  %286 = vmax.xlane.f32.xlu2 %v285_v43  ;;  %v266_v45 = vadd.f32 %v258_v17, %v257_v41  ;;  %v40_v43 = vld [vmem:[%s963_s2 + $0x38] sm:$0xff] }
  0x97   :  { %638 = vmatpush.msrb.mxu3 %v40_v43 }
  0x98   :  { %283 = vmax.xlane.f32.xlu1 %v282_v44  ;;  %v288_v47 = vsel %vm41_vm0, %v266_v45, -inf  ;;  %v37_v44 = vld [vmem:[%s963_s2 + $0x20] sm:$0xff] }
  0x9e   :  { %289 = vmax.xlane.f32.xlu2 %v288_v47  ;;  %280 = vmax.xlane.f32.xlu0 %v279_v48  ;;  %v38_v48 = vld [vmem:[%s963_s2 + $0x28] sm:$0xff] }
  0x9f   :  { %592 = vmatpush.msrb.mxu1 %v38_v48 }
  0xfb   :  { %v269_v49 = vpop.xlane.xlu1 %268 }
  0xfc   :  { %v291_v50 = vsub.f32 %v259_v20, %v269_v49 }
  0xfe   :  { %v299_v51 = vmul.f32 1.442695, %v291_v50 }
 0x100   :  { %679 = vpow2.f32 %v299_v51 }
 0x101   :  { %v275_v52 = vpop.xlane.xlu0 %274 }
 0x102   :  { %v293_v53 = vsub.f32 %v261_v27, %v275_v52 }
 0x103   :  { %v272_v54 = vpop.xlane.xlu1 %271 }
 0x104   :  { %v303_v55 = vmul.f32 1.442695, %v293_v53  ;;  %v292_v56 = vsub.f32 %v260_v25, %v272_v54  ;;  %v33_v25 = vld [vmem:[%s963_s2] sm:$0xff] }
 0x105   :  { %477 = vmatpush.msra.mxu0 %v33_v25 }
 0x106   :  { %v811_v57 = vpop.eup %679  ;;  %681 = vpow2.f32 %v303_v55  ;;  %v301_v59 = vmul.f32 1.442695, %v292_v56 }
 0x107   :  { %v315_v58 = vsel %vm41_vm0, %v811_v57, 0.0  ;;  %569 = vmatpush.msrb.mxu0 %v37_v44 }
 0x108   :  { %316 = vadd.xlane.f32.xlu1 %v315_v58  ;;  %683 = vpow2.f32 %v301_v59 }
 0x109   :  { %v278_v60 = vpop.xlane.xlu0 %277  ;;  %v287_v61 = vpop.xlane.xlu2 %286 }
 0x10a   :  { %v294_v62 = vsub.f32 %v262_v33, %v278_v60  ;;  %v297_v1 = vsub.f32 %v265_v40, %v287_v61 }
 0x10b   :  { %v284_v4 = vpop.xlane.xlu1 %283 }
 0x10c   :  { %v815_v63 = vpop.eup %681  ;;  %v305_v0 = vmul.f32 1.442695, %v294_v62  ;;  %v311_v3 = vmul.f32 1.442695, %v297_v1  ;;  %v296_v11 = vsub.f32 %v264_v37, %v284_v4 }
 0x10d   :  { %v321_v2 = vsel %vm41_vm0, %v815_v63, 0.0 }
 0x10e   :  { %685 = vpow2.f32 %v305_v0  ;;  %322 = vadd.xlane.f32.xlu2 %v321_v2  ;;  %v819_v7 = vpop.eup %683  ;;  %v309_v16 = vmul.f32 1.442695, %v296_v11 }
 0x10f   :  { %687 = vpow2.f32 %v311_v3  ;;  %v318_v14 = vsel %vm41_vm0, %v819_v7, 0.0 }
 0x111   :  { %v290_v5 = vpop.xlane.xlu2 %289  ;;  %v281_v6 = vpop.xlane.xlu0 %280 }
 0x112   :  { %v298_v8 = vsub.f32 %v266_v45, %v290_v5  ;;  %v295_v9 = vsub.f32 %v263_v46, %v281_v6 }
 0x114   :  { %v821_v10 = vpop.eup %685  ;;  %v313_v12 = vmul.f32 1.442695, %v298_v8  ;;  %v307_v13 = vmul.f32 1.442695, %v295_v9 }
 0x115   :  { %v324_v15 = vsel %vm41_vm0, %v821_v10, 0.0  ;;  %v827_v17 = vpop.eup %687 }
 0x116   :  { %689 = vpow2.f32 %v313_v12  ;;  %319 = vadd.xlane.f32.xlu2 %v318_v14  ;;  %325 = vadd.xlane.f32.xlu0 %v324_v15  ;;  %v333_v21 = vsel %vm41_vm0, %v827_v17, 0.0 }
 0x117   :  { %691 = vpow2.f32 %v307_v13 }
 0x118   :  { %693 = vpow2.f32 %v309_v16 }
 0x11c   :  { %v829_v18 = vpop.eup %689 }
 0x11d   :  { %v831_v19 = vpop.eup %691  ;;  %v336_v20 = vsel %vm41_vm0, %v829_v18, 0.0 }
 0x11e   :  { %337 = vadd.xlane.f32.xlu1 %v336_v20  ;;  %334 = vadd.xlane.f32.xlu0 %v333_v21  ;;  %v327_v22 = vsel %vm41_vm0, %v831_v19, 0.0  ;;  %v839_v23 = vpop.eup %693 }
 0x11f   :  { %328 = vadd.xlane.f32.xlu2 %v327_v22  ;;  %v330_v24 = vsel %vm41_vm0, %v839_v23, 0.0 }
 0x126   :  { %331 = vadd.xlane.f32.xlu0 %v330_v24 }
 0x17b   :  { %v317_v27 = vpop.xlane.xlu1 %316 }
 0x17c   :  { %695 = vrcp.f32 %v317_v27  ;;  %v350_v34 = vand.u32 2147483648, %v317_v27  ;;  %v348_v36 = vand.u32 2147483647, %v317_v27  ;;  %vm344_vm2 = vweird.f32 %v317_v27 }
 0x17e   :  { %v351_v45 = vor.u32 1.1754944e-38, %v350_v34  ;;  %vm349_vm4 = vcmp.eq.f32.partialorder %v348_v36, 8.507059e+37 }
 0x181   :  { %v323_v28 = vpop.xlane.xlu2 %322 }
 0x182   :  { %v696_v31 = vpop.eup %695  ;;  %697 = vrcp.f32 %v323_v28  ;;  %v378_v53 = vand.u32 2147483647, %v323_v28  ;;  %v380_v54 = vand.u32 2147483648, %v323_v28  ;;  %vm374_vm6 = vweird.f32 %v323_v28 }
 0x183   :  { %v340_v32 = vmul.f32 %v696_v31, %v317_v27  ;;  %vm345_vm1 = vweird.f32 %v696_v31 }
 0x184   :  { %vm346_vm3 = vmor %vm344_vm2, %vm345_vm1  ;;  %vm379_vm8 = vcmp.eq.f32.partialorder %v378_v53, 8.507059e+37  ;;  %v381_v1 = vor.u32 1.1754944e-38, %v380_v54 }
 0x185   :  { %v341_v33 = vsub.f32 1.0, %v340_v32 }
 0x187   :  { %v342_v35 = vmul.f32 %v696_v31, %v341_v33 }
 0x188   :  { %v698_v37 = vpop.eup %697 }
 0x189   :  { %v343_v38 = vadd.f32 %v696_v31, %v342_v35  ;;  %v370_v39 = vmul.f32 %v698_v37, %v323_v28  ;;  %v320_v40 = vpop.xlane.xlu2 %319  ;;  %v326_v41 = vpop.xlane.xlu0 %325  ;;  %vm375_vm5 = vweird.f32 %v698_v37 }
 0x18a   :  { %699 = vrcp.f32 %v320_v40  ;;  %vm869_vm7 = vmor %vm374_vm6, %vm375_vm5  ;;  %v363_v3 = vand.u32 2147483647, %v320_v40  ;;  %v365_v4 = vand.u32 2147483648, %v320_v40  ;;  %v393_v6 = vand.u32 2147483647, %v326_v41 }
 0x18b   :  { %v347_v46 = vsel %vm346_vm3, %v696_v31, %v343_v38  ;;  %v371_v47 = vsub.f32 1.0, %v370_v39  ;;  %701 = vrcp.f32 %v326_v41  ;;  %v395_v11 = vand.u32 2147483648, %v326_v41 }
 0x18c   :  { %v352_v49 = vsel %vm349_vm4, %v351_v45, %v347_v46  ;;  %vm359_vm11 = vweird.f32 %v320_v40  ;;  %vm389_vm12 = vweird.f32 %v326_v41  ;;  %vm364_vm14 = vcmp.eq.f32.partialorder %v363_v3, 8.507059e+37 }
 0x18d   :  { %v372_v50 = vmul.f32 %v698_v37, %v371_v47  ;;  %v353_v51 = vmul.f32 %v811_v57, %v352_v49  ;;  %v366_v15 = vor.u32 1.1754944e-38, %v365_v4  ;;  %vm394_vm1 = vcmp.eq.f32.partialorder %v393_v6, 8.507059e+37 }
 0x18e   :  { %v396_v22 = vor.u32 1.1754944e-38, %v395_v11 }
 0x18f   :  { %v373_v52 = vadd.f32 %v698_v37, %v372_v50  ;;  %671 = vmatmul.msk.f32.vlgmr.msra.gmra.mxu0 %vm41_vm0, %v353_v51 }
 0x190   :  { %v700_v55 = vpop.eup %699 }
 0x191   :  { %v702_v56 = vpop.eup %701  ;;  %v355_v59 = vmul.f32 %v700_v55, %v320_v40  ;;  %v873_v60 = vpop.xlane.xlu1 %337  ;;  %v377_v57 = vsel %vm869_vm7, %v698_v37, %v373_v52  ;;  %vm360_vm9 = vweird.f32 %v700_v55 }
 0x192   :  { %v875_v61 = vpop.xlane.xlu0 %334  ;;  %v385_v62 = vmul.f32 %v702_v56, %v326_v41  ;;  %703 = vrcp.f32 %v873_v60  ;;  %v880_v0 = vpop.xlane.xlu2 %328  ;;  %v382_v8 = vsel %vm379_vm8, %v381_v1, %v377_v57  ;;  %vm390_vm10 = vweird.f32 %v702_v56  ;;  %vm361_vm13 = vmor %vm359_vm11, %vm360_vm9 }
 0x193   :  { %v356_v2 = vsub.f32 1.0, %v355_v59  ;;  %705 = vrcp.f32 %v880_v0  ;;  %v383_v20 = vmul.f32 %v815_v63, %v382_v8  ;;  %vm391_vm15 = vmor %vm389_vm12, %vm390_vm10  ;;  %vm449_vm2 = vweird.f32 %v873_v60 }
 0x194   :  { %v386_v5 = vsub.f32 1.0, %v385_v62  ;;  %707 = vrcp.f32 %v875_v61  ;;  %v453_v63 = vand.u32 2147483647, %v873_v60  ;;  %v455_v33 = vand.u32 2147483648, %v873_v60 }
 0x195   :  { %v357_v9 = vmul.f32 %v700_v55, %v356_v2  ;;  %673 = vmatmul.msk.f32.vlgmr.msra.gmra.mxu2 %vm41_vm0, %v383_v20  ;;  %vm404_vm3 = vweird.f32 %v880_v0  ;;  %v408_v34 = vand.u32 2147483647, %v880_v0  ;;  %v410_v39 = vand.u32 2147483648, %v880_v0 }
 0x196   :  { %v387_v12 = vmul.f32 %v702_v56, %v386_v5  ;;  %v438_v40 = vand.u32 2147483647, %v875_v61  ;;  %v440_v41 = vand.u32 2147483648, %v875_v61  ;;  %vm454_vm7 = vcmp.eq.f32.partialorder %v453_v63, 8.507059e+37 }
 0x197   :  { %v358_v13 = vadd.f32 %v700_v55, %v357_v9  ;;  %v456_v46 = vor.u32 1.1754944e-38, %v455_v33  ;;  %vm905_vm8 = vcmp.eq.f32.partialorder %v408_v34, 8.507059e+37  ;;  %v411_v52 = vor.u32 1.1754944e-38, %v410_v39 }
 0x198   :  { %v704_v14 = vpop.eup %703  ;;  %v388_v16 = vadd.f32 %v702_v56, %v387_v12  ;;  %vm434_vm11 = vweird.f32 %v875_v61  ;;  %vm439_vm12 = vcmp.eq.f32.partialorder %v438_v40, 8.507059e+37 }
 0x199   :  { %v362_v21 = vsel %vm361_vm13, %v700_v55, %v358_v13  ;;  %v445_v24 = vmul.f32 %v704_v14, %v873_v60  ;;  %v706_v26 = vpop.eup %705  ;;  %vm450_vm4 = vweird.f32 %v704_v14  ;;  %v441_v55 = vor.u32 1.1754944e-38, %v440_v41 }
 0x19a   :  { %v886_v25 = vpop.xlane.xlu0 %331  ;;  %v367_v27 = vsel %vm364_vm14, %v366_v15, %v362_v21  ;;  %v392_v28 = vsel %vm391_vm15, %v702_v56, %v388_v16  ;;  %v400_v31 = vmul.f32 %v706_v26, %v880_v0  ;;  %v708_v32 = vpop.eup %707  ;;  %vm405_vm5 = vweird.f32 %v706_v26  ;;  %vm451_vm6 = vmor %vm449_vm2, %vm450_vm4 }
 0x19b   :  { %709 = vrcp.f32 %v886_v25  ;;  %v397_v29 = vsel %vm394_vm1, %v396_v22, %v392_v28  ;;  %v446_v30 = vsub.f32 1.0, %v445_v24  ;;  %v368_v35 = vmul.f32 %v819_v7, %v367_v27  ;;  %vm406_vm10 = vmor %vm404_vm3, %vm405_vm5 }
 0x19c   :  { %v401_v37 = vsub.f32 1.0, %v400_v31  ;;  %v430_v38 = vmul.f32 %v708_v32, %v875_v61  ;;  %v398_v42 = vmul.f32 %v821_v10, %v397_v29  ;;  %vm435_vm9 = vweird.f32 %v708_v32 }
 0x19d   :  { %v447_v36 = vmul.f32 %v704_v14, %v446_v30  ;;  %672 = vmatmul.msk.f32.vlgmr.msra.gmra.mxu1 %vm41_vm0, %v368_v35  ;;  %vm436_vm13 = vmor %vm434_vm11, %vm435_vm9  ;;  %v423_v60 = vand.u32 2147483647, %v886_v25  ;;  %v425_v57 = vand.u32 2147483648, %v886_v25  ;;  %vm419_vm15 = vweird.f32 %v886_v25 }
 0x19e   :  { %v402_v44 = vmul.f32 %v706_v26, %v401_v37  ;;  %v431_v45 = vsub.f32 1.0, %v430_v38  ;;  %674 = vmatmul.msk.f32.vlgmr.msra.gmra.mxu3 %vm41_vm0, %v398_v42 }
 0x19f   :  { %v448_v43 = vadd.f32 %v704_v14, %v447_v36  ;;  %v426_v3 = vor.u32 1.1754944e-38, %v425_v57  ;;  %vm424_vm2 = vcmp.eq.f32.partialorder %v423_v60, 8.507059e+37 }
 0x1a0   :  { %v403_v49 = vadd.f32 %v706_v26, %v402_v44  ;;  %v432_v10 = vmul.f32 %v708_v32, %v431_v45 }
 0x1a1   :  { %v710_v7 = vpop.eup %709  ;;  %v452_v48 = vsel %vm451_vm6, %v704_v14, %v448_v43 }
 0x1a2   :  { %v415_v50 = vmul.f32 %v710_v7, %v886_v25  ;;  %v457_v51 = vsel %vm454_vm7, %v456_v46, %v452_v48  ;;  %v407_v53 = vsel %vm406_vm10, %v706_v26, %v403_v49  ;;  %v433_v54 = vadd.f32 %v708_v32, %v432_v10 }
 0x1a3   :  { %v458_v58 = vmul.f32 %v829_v18, %v457_v51  ;;  %v412_v59 = vsel %vm905_vm8, %v411_v52, %v407_v53  ;;  %vm420_vm14 = vweird.f32 %v710_v7 }
 0x1a4   :  { %v416_v56 = vsub.f32 1.0, %v415_v50  ;;  %v413_v62 = vmul.f32 %v831_v19, %v412_v59  ;;  %v437_v0 = vsel %vm436_vm13, %v708_v32, %v433_v54  ;;  %vm421_vm1 = vmor %vm419_vm15, %vm420_vm14 }
 0x1a5   :  { %v442_v1 = vsel %vm439_vm12, %v441_v55, %v437_v0 }
 0x1a6   :  { %v417_v61 = vmul.f32 %v710_v7, %v416_v56  ;;  %675 = vmatmul.msk.f32.vlgmr.msrb.gmra.mxu0 %vm41_vm0, %v413_v62  ;;  %v443_v18 = vmul.f32 %v827_v17, %v442_v1  ;;  %678 = vmatmul.msk.f32.vlgmr.msrb.gmra.mxu3 %vm41_vm0, %v458_v58 }
 0x1a8   :  { %v418_v2 = vadd.f32 %v710_v7, %v417_v61  ;;  %677 = vmatmul.msk.f32.vlgmr.msrb.gmra.mxu2 %vm41_vm0, %v443_v18 }
 0x1aa   :  { %v422_v4 = vsel %vm421_vm1, %v710_v7, %v418_v2 }
 0x1ab   :  { %v427_v19 = vsel %vm424_vm2, %v426_v3, %v422_v4 }
 0x1ac   :  { %v428_v5 = vmul.f32 %v839_v23, %v427_v19 }
 0x1ae   :  { %676 = vmatmul.msk.f32.vlgmr.msrb.gmra.mxu1 %vm41_vm0, %v428_v5 }
 0x20c   :  { %v479_v6 = vpop.f32.mrf.mxu0 }
 0x20d   :  { %643 = vst.msk [vmem:[%s964_s4] sm:$0xff] %vm41_vm0, %v479_v6 }
 0x218   :  { %v525_v8 = vpop.f32.mrf.mxu2 }
 0x219   :  { %645 = vst.msk [vmem:[%s964_s4 + $0x10] sm:$0xff] %vm41_vm0, %v525_v8 }
 0x21a   :  { %v502_v17 = vpop.f32.mrf.mxu1 }
 0x21b   :  { %644 = vst.msk [vmem:[%s964_s4 + $0x8] sm:$0xff] %vm41_vm0, %v502_v17 }
 0x221   :  { %v548_v23 = vpop.f32.mrf.mxu3 }
 0x222   :  { %646 = vst.msk [vmem:[%s964_s4 + $0x18] sm:$0xff] %vm41_vm0, %v548_v23 }
 0x223   :  { %v571_v9 = vpop.f32.mrf.mxu0 }
 0x224   :  { %647 = vst.msk [vmem:[%s964_s4 + $0x20] sm:$0xff] %vm41_vm0, %v571_v9 }
 0x229   :  { %v640_v12 = vpop.f32.mrf.mxu3 }
 0x22a   :  { %650 = vst.msk [vmem:[%s964_s4 + $0x38] sm:$0xff] %vm41_vm0, %v640_v12 }
 0x22b   :  { %v594_v11 = vpop.f32.mrf.mxu1  ;;  %v617_v13 = vpop.f32.mrf.mxu2 }
 0x22c   :  { %648 = vst.msk [vmem:[%s964_s4 + $0x28] sm:$0xff] %vm41_vm0, %v594_v11 }
 0x22d   :  { %649 = vst.msk [vmem:[%s964_s4 + $0x30] sm:$0xff] %vm41_vm0, %v617_v13 }

// kernel: transformer_forward.50
= control target key start
LH: loop header
LB: loop body
LE: loop exit
PB: predicated region body
PF: predicated region fallthrough
CT: control target
= control target key end

     0   :  { %vm30_vm0 = vcmask 261120   ;;  %vm74_vm1 = vcmask 523264   ;;  %s216_s1 = inlined_call_operand.vmem [shape: f32[32,64], index: 1, kind: input, shape index: {}]   ;;  %s217_s3 = inlined_call_operand.vmem [shape: f32[64,32], index: 3, kind: input, shape index: {}]   ;;  %s218_s0 = inlined_call_operand.vmem [shape: f32[16,32], index: 0, kind: input, shape index: {}]   ;;  %s219_s2 = inlined_call_operand.vmem [shape: f32[1,64], index: 2, kind: input, shape index: {}]   ;;  %s220_s4 = inlined_call_operand.vmem [shape: f32[1,32], index: 4, kind: input, shape index: {}]   ;;  %s221_s5 = inlined_call_operand.vmem [shape: f32[16,32], index: 5, kind: output, shape index: {}]  }
   0x1   :  { %v25_v0 = vld [vmem:[%s216_s1 + $0x18] sm:$0xff]  ;;  %v24_v1 = vld [vmem:[%s216_s1 + $0x10] sm:$0xff]  ;;  %v23_v2 = vld [vmem:[%s216_s1 + $0x8] sm:$0xff] }
   0x2   :  { %114 = vmatpush.msra.mxu3 %v25_v0  ;;  %49 = vmatpush.msra.mxu0 %v25_v0  ;;  %v69_v3 = vld [vmem:[%s217_s3 + $0x38] sm:$0xff]  ;;  %v68_v4 = vld [vmem:[%s217_s3 + $0x30] sm:$0xff]  ;;  %v22_v5 = vld [vmem:[%s216_s1] sm:$0xff] }
   0x3   :  { %118 = vmatpush.msra.mxu2 %v69_v3  ;;  %89 = vmatpush.msra.mxu1 %v69_v3  ;;  %v21_v6 = vld [vmem:[%s218_s0 + $0x8] sm:$0xff]  ;;  %v20_v7 = vld [vmem:[%s218_s0] sm:$0xff]  ;;  %v65_v10 = vld [vmem:[%s217_s3 + $0x18] sm:$0xff] }
   0x4   :  { %115 = vmatpush.msra.mxu3 %v24_v1  ;;  %50 = vmatpush.msra.mxu0 %v24_v1  ;;  %v67_v8 = vld [vmem:[%s217_s3 + $0x28] sm:$0xff]  ;;  %v66_v9 = vld [vmem:[%s217_s3 + $0x20] sm:$0xff]  ;;  %v64_v11 = vld [vmem:[%s217_s3 + $0x10] sm:$0xff] }
   0x5   :  { %119 = vmatpush.msra.mxu2 %v68_v4  ;;  %90 = vmatpush.msra.mxu1 %v68_v4  ;;  %v63_v12 = vld [vmem:[%s217_s3 + $0x8] sm:$0xff]  ;;  %v62_v13 = vld [vmem:[%s217_s3] sm:$0xff] }
   0x6   :  { %116 = vmatpush.msra.mxu3 %v23_v2  ;;  %51 = vmatpush.msra.mxu0 %v23_v2  ;;  %v126_v14 = vld [vmem:[%s219_s2] ss:$0 sm:$0xff] }
   0x7   :  { %120 = vmatpush.msra.mxu2 %v67_v8  ;;  %91 = vmatpush.msra.mxu1 %v67_v8  ;;  %v127_v21 = vld [vmem:[%s220_s4] ss:$0 sm:$0xff] }
   0x8   :  { %117 = vmatpush.msra.mxu3 %v22_v5  ;;  %52 = vmatpush.msra.mxu0 %v22_v5 }
   0x9   :  { %111 = vmatmul.msk.f32.vlgmr.msra.gmra.mxu3 %vm30_vm0, %v21_v6  ;;  %110 = vmatmul.msk.f32.vlgmr.msra.gmra.mxu0 %vm30_vm0, %v20_v7 }
   0xa   :  { %121 = vmatpush.msra.mxu2 %v66_v9  ;;  %92 = vmatpush.msra.mxu1 %v66_v9 }
   0xc   :  { %122 = vmatpush.msra.mxu2 %v65_v10  ;;  %93 = vmatpush.msra.mxu1 %v65_v10 }
   0xe   :  { %123 = vmatpush.msra.mxu2 %v64_v11  ;;  %94 = vmatpush.msra.mxu1 %v64_v11 }
  0x10   :  { %124 = vmatpush.msra.mxu2 %v63_v12  ;;  %95 = vmatpush.msra.mxu1 %v63_v12 }
  0x12   :  { %125 = vmatpush.msra.mxu2 %v62_v13  ;;  %96 = vmatpush.msra.mxu1 %v62_v13 }
  0x86   :  { %v54_v15 = vpop.f32.mrf.mxu0 }
  0x87   :  { %v55_v16 = vadd.f32 %v126_v14, %v54_v15 }
  0x89   :  { %v60_v17 = vmax.f32 %v55_v16, 0.0 }
  0x8b   :  { %112 = vmatmul.msk.f32.vlgmr.msra.gmra.mxu1 %vm74_vm1, %v60_v17 }
  0x8c   :  { %v57_v18 = vpop.f32.mrf.mxu3 }
  0x8d   :  { %v58_v19 = vadd.f32 %v126_v14, %v57_v18 }
  0x8f   :  { %v61_v20 = vmax.f32 %v58_v19, 0.0 }
  0x91   :  { %113 = vmatmul.msk.f32.vlgmr.msra.gmra.mxu2 %vm74_vm1, %v61_v20 }
 0x108   :  { %v98_v22 = vpop.f32.mrf.mxu1 }
 0x109   :  { %v99_v23 = vadd.f32 %v127_v21, %v98_v22 }
 0x10b   :  { %104 = vst.msk [vmem:[%s221_s5] sm:$0xff] %vm30_vm0, %v99_v23 }
 0x114   :  { %v101_v24 = vpop.f32.mrf.mxu2 }
 0x115   :  { %v102_v25 = vadd.f32 %v127_v21, %v101_v24 }
 0x117   :  { %105 = vst.msk [vmem:[%s221_s5 + $0x8] sm:$0xff] %vm30_vm0, %v102_v25 }

// kernel: transformer_forward.87
= control target key start
LH: loop header
LB: loop body
LE: loop exit
PB: predicated region body
PF: predicated region fallthrough
CT: control target
= control target key end

     0   :  { %vm24_vm0 = vcmask 261120   ;;  %s202_s0 = inlined_call_operand.vmem [shape: f32[16,32], index: 0, kind: input, shape index: {}]   ;;  %s203_s1 = inlined_call_operand.vmem [shape: f32[16,32], index: 1, kind: input, shape index: {}]   ;;  %s204_s2 = inlined_call_operand.vmem [shape: f32[1,32], index: 2, kind: input, shape index: {}]   ;;  %s205_s3 = inlined_call_operand.vmem [shape: f32[1,32], index: 3, kind: input, shape index: {}]   ;;  %s206_s4 = inlined_call_operand.hbm [shape: f32[16,32], index: 4, kind: output, shape index: {}]  }
   0x1   :  { %v18_v0 = vld [vmem:[%s202_s0] sm:$0xff] }
   0x2   :  { %v20_v1 = vld [vmem:[%s203_s1] sm:$0xff] }
   0x3   :  { %v22_v2 = vadd.f32 %v20_v1, %v18_v0 }
   0x4   :  { %9 = vsyncpa [#allocation3], 0  ;;  %v19_v3 = vld [vmem:[%s202_s0 + $0x8] sm:$0xff]  ;;  %v146_v8 = vmov 32.0   ;;  %v112_v39 = vld [vmem:[%s204_s2] ss:$0 sm:$0xff] }
   0x5   :  { %v21_v4 = vld [vmem:[%s203_s1 + $0x8] sm:$0xff]  ;;  %v25_v5 = vsel %vm24_vm0, %v22_v2, 0.0  ;;  %114 = vrcp.f32 %v146_v8  ;;  %v113_v43 = vld [vmem:[%s205_s3] ss:$0 sm:$0xff]  ;;  %s147_s2 = smov [#allocation2]   ;;  %s96_s28 = sshll.u32 %s206_s4, 4  ;;  %s97_s28 = int_to_ptr.hbm [resolvable:$true] %s96_s28 }
   0x6   :  { %26 = vadd.xlane.f32.xlu0 %v25_v5  ;;  %v23_v6 = vadd.f32 %v21_v4, %v19_v3  ;;  %s94_s25 = sshll.u32 %s147_s2, 4  ;;  %s148_s3 = smov 128   ;;  %s95_s25 = int_to_ptr.vmem [resolvable:$true] %s94_s25 }
   0x7   :  { %s149_s29 = smov 8  }
   0x8   :  { %v28_v7 = vsel %vm24_vm0, %v23_v6, 0.0 }
   0xb   :  { %v115_v9 = vpop.eup %114 }
   0xc   :  { %v32_v10 = vmul.f32 32.0, %v115_v9  ;;  %vm36_vm1 = vweird.f32 %v115_v9 }
   0xe   :  { %29 = vadd.xlane.f32.xlu0 %v28_v7  ;;  %v33_v11 = vsub.f32 1.0, %v32_v10 }
  0x10   :  { %v34_v12 = vmul.f32 %v115_v9, %v33_v11 }
  0x12   :  { %v35_v13 = vadd.f32 %v115_v9, %v34_v12 }
  0x14   :  { %v37_v14 = vsel %vm36_vm1, %v115_v9, %v35_v13 }
  0x79   :  { %v27_v15 = vpop.xlane.xlu0 %26 }
  0x7a   :  { %v38_v16 = vmul.f32 %v37_v14, %v27_v15 }
  0x7c   :  { %v40_v17 = vsub.f32 %v22_v2, %v38_v16 }
  0x7e   :  { %v42_v18 = vmul.f32 %v40_v17, %v40_v17 }
  0x80   :  { %v44_v19 = vsel %vm24_vm0, %v42_v18, 0.0 }
  0x81   :  { %45 = vadd.xlane.f32.xlu1 %v44_v19  ;;  %v30_v20 = vpop.xlane.xlu0 %29 }
  0x82   :  { %v39_v21 = vmul.f32 %v37_v14, %v30_v20 }
  0x84   :  { %v41_v22 = vsub.f32 %v23_v6, %v39_v21 }
  0x86   :  { %v43_v23 = vmul.f32 %v41_v22, %v41_v22 }
  0x88   :  { %v47_v24 = vsel %vm24_vm0, %v43_v23, 0.0 }
  0x89   :  { %48 = vadd.xlane.f32.xlu1 %v47_v24 }
  0xf4   :  { %v46_v25 = vpop.xlane.xlu1 %45 }
  0xf5   :  { %v50_v26 = vmul.f32 %v46_v25, %v37_v14 }
  0xf7   :  { %v52_v27 = vadd.f32 1e-05, %v50_v26 }
  0xf9   :  { %116 = vrsqrt.f32 %v52_v27  ;;  %vm60_vm3 = vweird.f32 %v52_v27 }
  0xfc   :  { %v49_v28 = vpop.xlane.xlu1 %48 }
  0xfd   :  { %v51_v29 = vmul.f32 %v49_v28, %v37_v14 }
  0xff   :  { %v117_v30 = vpop.eup %116  ;;  %v53_v31 = vadd.f32 1e-05, %v51_v29 }
 0x100   :  { %v55_v32 = vmul.f32 %v117_v30, %v52_v27  ;;  %vm61_vm2 = vweird.f32 %v117_v30 }
 0x101   :  { %118 = vrsqrt.f32 %v53_v31  ;;  %vm62_vm4 = vmor %vm60_vm3, %vm61_vm2  ;;  %vm70_vm6 = vweird.f32 %v53_v31 }
 0x102   :  { %v56_v33 = vmul.f32 %v117_v30, %v55_v32 }
 0x104   :  { %v57_v34 = vmul.f32 0.5, %v56_v33 }
 0x106   :  { %v58_v35 = vsub.f32 1.5, %v57_v34 }
 0x107   :  { %v119_v36 = vpop.eup %118 }
 0x108   :  { %v59_v37 = vmul.f32 %v117_v30, %v58_v35  ;;  %v65_v38 = vmul.f32 %v119_v36, %v53_v31  ;;  %vm71_vm5 = vweird.f32 %v119_v36 }
 0x109   :  { %vm72_vm7 = vmor %vm70_vm6, %vm71_vm5 }
 0x10a   :  { %v63_v40 = vsel %vm62_vm4, %v117_v30, %v59_v37  ;;  %v66_v41 = vmul.f32 %v119_v36, %v65_v38 }
 0x10b   :  { %v74_v42 = vmul.f32 %v63_v40, %v40_v17 }
 0x10c   :  { %v67_v44 = vmul.f32 0.5, %v66_v41 }
 0x10d   :  { %v80_v45 = vmul.f32 %v112_v39, %v74_v42 }
 0x10e   :  { %v68_v46 = vsub.f32 1.5, %v67_v44 }
 0x10f   :  { %v86_v47 = vadd.f32 %v113_v43, %v80_v45 }
 0x110   :  { %v69_v48 = vmul.f32 %v119_v36, %v68_v46 }
 0x111   :  { %88 = vst.msk [vmem:[#allocation2] sm:$0xff] %vm24_vm0, %v86_v47 }
 0x112   :  { %v73_v49 = vsel %vm72_vm7, %v119_v36, %v69_v48 }
 0x113   :  { %v75_v50 = vmul.f32 %v73_v49, %v41_v22 }
 0x115   :  { %v81_v51 = vmul.f32 %v112_v39, %v75_v50 }
 0x117   :  { %v87_v52 = vadd.f32 %v113_v43, %v81_v51 }
 0x119   :  { %89 = vst.msk [vmem:[#allocation2 + $0x8] sm:$0xff] %vm24_vm0, %v87_v52 }
 0x11a   :  { %102 = dma.vmem_to_hbm [thread:$0]  %s95_s25, 256, %s97_s28, [#allocation3], %s148_s3, %s148_s3, %s149_s29  }
 0x11b   :  { %144 = dma.done.wait [#allocation3], 256  }
 0x11c   :  { %145 = vsyncadd [#allocation3], 4294967040 }
 0x11d   :  { %107 = vsyncpa [#allocation3], 1 }

</bundles_post_ra>
